<compile_context>
chip_gen: v7x
topology: tpu7x:2x2x1
jax: 0.10.0
libtpu: 0.0.40
codegen_flags: <defaults>
</compile_context>

<pallas_src>
import functools
import math

import numpy as np
import jax
import jax.numpy as jnp
from jax import lax
from jax.experimental import pallas as pl
from jax.experimental.pallas import tpu as pltpu

_BN_EPS = 1e-5


# -----------------------------------------------------------------------------
# Fused CoT3 kernel: one grid step = `bb` batch elements, lane width L = bb*H*W
# -----------------------------------------------------------------------------
def _cot3_fused_kernel(x_ref, masks_ref, seg_ref,
                       cv1_w_ref, cv1_b_ref, cv2_w_ref, cv2_b_ref,
                       bcv1_w_ref, bcv1_b_ref, ke_w_ref, ke_b_ref,
                       ve_w_ref, ve_b_ref, ae1_w_ref, ae1_b_ref,
                       ae2_w_ref, ae2_b_ref, cv3_w_ref, cv3_b_ref,
                       o_ref, *, W):
    x = x_ref[0]                                   # (C1, L)
    L = x.shape[-1]
    bb = seg_ref.shape[0]                          # images per grid step
    nb = bcv1_w_ref.shape[0]                       # number of CoTBottlenecks

    def silu(y):
        # sigmoid via EUP reciprocal (approx) -> keeps the VALU slot free
        return y * pl.reciprocal(1.0 + jnp.exp(-y), approx=True)

    def mm(w, a):
        return jnp.dot(w, a, preferred_element_type=jnp.float32)

    x1 = silu(mm(cv1_w_ref[...], x) + cv1_b_ref[...])          # (c_, L)
    x2 = silu(mm(cv2_w_ref[...], x) + cv2_b_ref[...])          # (c_, L)

    hcur = x1
    for blk in range(nb):
        # --- bottleneck cv1 (1x1 conv + BN + SiLU) -------------------------
        y1 = silu(mm(bcv1_w_ref[blk], hcur) + bcv1_b_ref[blk])  # (c_, L)

        # --- key_embed: grouped 3x3 conv via 9 lane rolls + static masks ----
        # Taps are stacked along the contraction axis -> one matmul, K = 9*c_.
        taps = []
        t = 0
        for ky in (-1, 0, 1):
            for kx in (-1, 0, 1):
                off = ky * W + kx
                shifted = y1 if off == 0 else pltpu.roll(y1, (-off) % L, 1)
                taps.append(shifted * masks_ref[t])              # (c_, L)
                t += 1
        stacked = jnp.concatenate(taps, axis=0)                  # (9*c_, L)
        k1 = jnp.maximum(mm(ke_w_ref[blk], stacked) + ke_b_ref[blk], 0.0)

        # --- value_embed (1x1 conv + BN) ------------------------------------
        v = mm(ve_w_ref[blk], y1) + ve_b_ref[blk]                # (c_, L)

        # --- attention_embed stage 1 on the fused concat [k1 ; y1] ----------
        cat1 = jnp.concatenate([k1, y1], axis=0)                 # (2*c_, L)
        att1 = jnp.maximum(mm(ae1_w_ref[blk], cat1) + ae1_b_ref[blk], 0.0)

        # --- attention_embed stage 2 (mean over the 9 taps folded in) -------
        att = mm(ae2_w_ref[blk], att1) + ae2_b_ref[blk]          # (c_, L)

        # --- per-image softmax over H*W (images = disjoint lane segments) ---
        neg = jnp.float32(-1e30)
        m_full = jnp.zeros_like(att)
        for b in range(bb):
            mb = seg_ref[b]                                      # (1, L)
            m_b = jnp.max(jnp.where(mb > 0, att, neg), axis=-1, keepdims=True)
            m_full = m_full + m_b * mb
        e = jnp.exp(att - m_full)
        d_full = jnp.zeros_like(att)
        for b in range(bb):
            mb = seg_ref[b]
            d_b = jnp.sum(e * mb, axis=-1, keepdims=True)
            d_full = d_full + d_b * mb
        sm = e * pl.reciprocal(d_full, approx=True)

        # --- CoT output (k1 + k2) + bottleneck residual ----------------------
        hcur = hcur + k1 + sm * v

    # --- cv3 on the fused concat [hcur ; x2] ---------------------------------
    cat2 = jnp.concatenate([hcur, x2], axis=0)                   # (2*c_, L)
    out = silu(mm(cv3_w_ref[...], cat2) + cv3_b_ref[...])
    o_ref[0] = out.astype(o_ref.dtype)


# -----------------------------------------------------------------------------
# Host-side constants: tap boundary masks and image-segment masks
# -----------------------------------------------------------------------------
def _build_masks(H, W, bb):
    hw = H * W
    hh = np.arange(hw) // W
    ww = np.arange(hw) % W
    m = np.zeros((9, hw), np.float32)
    t = 0
    for ky in (-1, 0, 1):
        for kx in (-1, 0, 1):
            valid = ((hh + ky >= 0) & (hh + ky < H) &
                     (ww + kx >= 0) & (ww + kx < W))
            m[t] = valid.astype(np.float32)
            t += 1
    m = np.tile(m, (1, bb))                       # (9, bb*hw)
    return jnp.asarray(m[:, None, :])             # (9, 1, bb*hw)


def _build_seg(hw, bb):
    seg = np.zeros((bb, 1, bb * hw), np.float32)
    for b in range(bb):
        seg[b, 0, b * hw:(b + 1) * hw] = 1.0
    return jnp.asarray(seg)                       # (bb, 1, bb*hw)


# -----------------------------------------------------------------------------
# Full CoT3 forward: one fused pallas_call over batch chunks
# -----------------------------------------------------------------------------
def cot3_forward(x, params):
    n, c1, H, W = x.shape
    hw = H * W
    c2 = params["cv3_w"].shape[0]
    c_ = params["cv1_w"].shape[0]
    c2f = params["ae1_w"].shape[1]
    nb = params["bcv1_w"].shape[0]

    # choose how many batch elements to flatten into the lane axis per step
    bb = 1
    for d in range(min(n, 8), 0, -1):
        if n % d == 0:
            bb = d
            break
    nchunks = n // bb
    L = bb * hw

    xf = jnp.transpose(x.reshape(nchunks, bb, c1, hw), (0, 2, 1, 3)) \
            .reshape(nchunks, c1, L)
    masks = _build_masks(H, W, bb)                # (9, 1, L)
    seg = _build_seg(hw, bb)                      # (bb, 1, L)

    def full(shape):
        return pl.BlockSpec(shape, lambda i, _r=len(shape): (0,) * _r)

    in_specs = [
        pl.BlockSpec((1, c1, L), lambda i: (i, 0, 0)),   # x chunk
        full((9, 1, L)),                                  # tap boundary masks
        full((bb, 1, L)),                                 # image segment masks
        full((c_, c1)), full((c_, 1)),                    # cv1
        full((c_, c1)), full((c_, 1)),                    # cv2
        full((nb, c_, c_)), full((nb, c_, 1)),            # bottleneck cv1
        full((nb, c_, 9 * c_)), full((nb, c_, 1)),        # key_embed (taps stacked)
        full((nb, c_, c_)), full((nb, c_, 1)),            # value_embed
        full((nb, c2f, 2 * c_)), full((nb, c2f, 1)),      # attention_embed[0]
        full((nb, c_, c2f)), full((nb, c_, 1)),           # attention_embed[1] (mean folded)
        full((c2, 2 * c_)), full((c2, 1)),                # cv3
    ]

    out = pl.pallas_call(
        functools.partial(_cot3_fused_kernel, W=W),
        out_shape=jax.ShapeDtypeStruct((nchunks, c2, L), x.dtype),
        grid=(nchunks,),
        in_specs=in_specs,
        out_specs=pl.BlockSpec((1, c2, L), lambda i: (i, 0, 0)),
        compiler_params=pltpu.CompilerParams(
            dimension_semantics=("parallel",)),
    )(xf, masks, seg,
      params["cv1_w"], params["cv1_b"], params["cv2_w"], params["cv2_b"],
      params["bcv1_w"], params["bcv1_b"], params["ke_w"], params["ke_b"],
      params["ve_w"], params["ve_b"], params["ae1_w"], params["ae1_b"],
      params["ae2_w"], params["ae2_b"], params["cv3_w"], params["cv3_b"])

    return jnp.transpose(out.reshape(nchunks, c2, bb, hw), (0, 2, 1, 3)) \
              .reshape(n, c2, H, W)


# -----------------------------------------------------------------------------
# Parameter setup: raw (PyTorch-style) params and inference-time folding.
# -----------------------------------------------------------------------------
def init_raw_params(key, c1, c2, n_blocks=1, e=0.5):
    c_ = int(c2 * e)
    c2f = 2 * c_ // 4

    def nxt():
        nonlocal key
        key, sub = jax.random.split(key)
        return sub

    def conv_w(co, ci):
        return jax.random.normal(nxt(), (co, ci), jnp.float32) / math.sqrt(ci)

    def bn(c):
        gamma = jax.random.uniform(nxt(), (c,), jnp.float32, 0.8, 1.2)
        beta = jax.random.normal(nxt(), (c,), jnp.float32) * 0.1
        mean = jax.random.normal(nxt(), (c,), jnp.float32) * 0.1
        var = jax.random.uniform(nxt(), (c,), jnp.float32, 0.5, 1.5)
        return (gamma, beta, mean, var)

    def bottleneck():
        return {
            "cv1": {"w": conv_w(c_, c_), "bn": bn(c_)},
            "ke": {"w": jax.random.normal(nxt(), (c_, c_ // 4, 3, 3), jnp.float32) * 0.2,
                   "bn": bn(c_)},
            "ve": {"w": conv_w(c_, c_), "bn": bn(c_)},
            "ae1": {"w": conv_w(c2f, 2 * c_), "bn": bn(c2f)},
            "ae2": {"w": conv_w(9 * c_, c2f),
                    "b": jax.random.normal(nxt(), (9 * c_,), jnp.float32) * 0.1},
        }

    return {
        "cv1": {"w": conv_w(c_, c1), "bn": bn(c_)},
        "cv2": {"w": conv_w(c_, c1), "bn": bn(c_)},
        "cv3": {"w": conv_w(c2, 2 * c_), "bn": bn(c2)},
        "m": [bottleneck() for _ in range(n_blocks)],
    }


def _fold_conv_bn(w, bn_p):
    gamma, beta, mean, var = bn_p
    s = gamma / jnp.sqrt(var + _BN_EPS)
    return w * s[:, None], (beta - mean * s)[:, None]


def _build_grouped_taps(w, bn_scale, groups=4):
    """(C, C/g, 3, 3) grouped conv weight -> (9, C, C) block-diagonal tap matrices."""
    c = w.shape[0]
    cg_out = c // groups
    cg_in = w.shape[1]
    ws = w * bn_scale[:, None, None, None]
    taps = jnp.zeros((9, c, c), w.dtype)
    for g in range(groups):
        blk = ws[g * cg_out:(g + 1) * cg_out]                 # (cg_out, cg_in, 3, 3)
        blk = jnp.transpose(blk, (2, 3, 0, 1)).reshape(9, cg_out, cg_in)
        taps = taps.at[:, g * cg_out:(g + 1) * cg_out,
                       g * cg_in:(g + 1) * cg_in].set(blk)
    return taps


def fold_params(raw, c_):
    p = {}
    p["cv1_w"], p["cv1_b"] = _fold_conv_bn(raw["cv1"]["w"], raw["cv1"]["bn"])
    p["cv2_w"], p["cv2_b"] = _fold_conv_bn(raw["cv2"]["w"], raw["cv2"]["bn"])
    p["cv3_w"], p["cv3_b"] = _fold_conv_bn(raw["cv3"]["w"], raw["cv3"]["bn"])

    keys = ["bcv1_w", "bcv1_b", "ke_w", "ke_b", "ve_w", "ve_b",
            "ae1_w", "ae1_b", "ae2_w", "ae2_b"]
    acc = {k: [] for k in keys}
    for braw in raw["m"]:
        w, b = _fold_conv_bn(braw["cv1"]["w"], braw["cv1"]["bn"])
        acc["bcv1_w"].append(w), acc["bcv1_b"].append(b)

        gamma, beta, mean, var = braw["ke"]["bn"]
        s = gamma / jnp.sqrt(var + _BN_EPS)
        taps = _build_grouped_taps(braw["ke"]["w"], s)        # (9, c_, c_)
        # tap-stacked contraction layout: ke_w[o, t*c_ + i] = taps[t, o, i]
        acc["ke_w"].append(jnp.transpose(taps, (1, 0, 2)).reshape(c_, 9 * c_))
        acc["ke_b"].append((beta - mean * s)[:, None])

        w, b = _fold_conv_bn(braw["ve"]["w"], braw["ve"]["bn"])
        acc["ve_w"].append(w), acc["ve_b"].append(b)

        w, b = _fold_conv_bn(braw["ae1"]["w"], braw["ae1"]["bn"])
        acc["ae1_w"].append(w), acc["ae1_b"].append(b)

        # fold the mean over the 3x3 taps (linear) into the last 1x1 conv
        acc["ae2_w"].append(braw["ae2"]["w"].reshape(c_, 9, -1).mean(axis=1))
        acc["ae2_b"].append(braw["ae2"]["b"].reshape(c_, 9).mean(axis=1)[:, None])
    for k in keys:
        p[k] = jnp.stack(acc[k], axis=0)
    return p


# -----------------------------------------------------------------------------
# Pure-JAX reference (mirrors the PyTorch forward, inference-mode BN)
# -----------------------------------------------------------------------------
def ref_cot3(x, raw):
    def bn(y, bp):
        g, b, m, v = bp
        s = g / jnp.sqrt(v + _BN_EPS)
        return (y - m[None, :, None, None]) * s[None, :, None, None] + b[None, :, None, None]

    def conv1x1(y, w):
        return jnp.einsum("oi,nihw->nohw", w, y)

    silu = lambda y: y * (1.0 / (1.0 + jnp.exp(-y)))
    relu = lambda y: jnp.maximum(y, 0.0)

    x1 = silu(bn(conv1x1(x, raw["cv1"]["w"]), raw["cv1"]["bn"]))
    x2 = silu(bn(conv1x1(x, raw["cv2"]["w"]), raw["cv2"]["bn"]))

    h_cur = x1
    for braw in raw["m"]:
        y1 = silu(bn(conv1x1(h_cur, braw["cv1"]["w"]), braw["cv1"]["bn"]))
        bs, c, hh, ww = y1.shape
        k1 = relu(bn(lax.conv_general_dilated(
            y1, braw["ke"]["w"], (1, 1), ((1, 1), (1, 1)),
            dimension_numbers=("NCHW", "OIHW", "NCHW"),
            feature_group_count=4), braw["ke"]["bn"]))
        v = bn(conv1x1(y1, braw["ve"]["w"]), braw["ve"]["bn"]).reshape(bs, c, -1)
        y_cat = jnp.concatenate([k1, y1], axis=1)
        att = relu(bn(conv1x1(y_cat, braw["ae1"]["w"]), braw["ae1"]["bn"]))
        att = conv1x1(att, braw["ae2"]["w"]) + braw["ae2"]["b"][None, :, None, None]
        att = att.reshape(bs, c, 9, hh, ww).mean(2).reshape(bs, c, -1)
        k2 = (jax.nn.softmax(att, axis=-1) * v).reshape(bs, c, hh, ww)
        h_cur = h_cur + (k1 + k2)                 # residual (shortcut=True)

    y_cat = jnp.concatenate([h_cur, x2], axis=1)
    return silu(bn(conv1x1(y_cat, raw["cv3"]["w"]), raw["cv3"]["bn"]))


# -----------------------------------------------------------------------------
# Demo / self-check
# -----------------------------------------------------------------------------
if __name__ == "__main__":
    key = jax.random.PRNGKey(0)
    kx, kp = jax.random.split(key)

    N, C1, C2, H, W = 2, 32, 32, 16, 16          # CoT3(c1=32, c2=32, n=1, e=0.5)
    c_ = int(C2 * 0.5)

    x = jax.random.normal(kx, (N, C1, H, W), jnp.float32)
    raw = init_raw_params(kp, C1, C2, n_blocks=1, e=0.5)
    params = fold_params(raw, c_)

    fwd = jax.jit(cot3_forward)
    out = jax.block_until_ready(fwd(x, params))

    with jax.default_matmul_precision("float32"):
        ref = ref_cot3(x, raw)

    assert out.shape == (N, C2, H, W), out.shape
    max_err = float(jnp.max(jnp.abs(out - ref)))
    assert jnp.allclose(out, ref, atol=1e-2, rtol=1e-2), f"max abs err {max_err}"

    print("KERNEL_OK")
</pallas_src>

<mosaic_0001>
module attributes {stable_mosaic.version = 11 : i64} {
  func.func @_cot3_fused_kernel(%arg0: i32, %arg1: memref<1x32x512xf32, #tpu.memory_space<vmem>>, %arg2: memref<9x1x512xf32, #tpu.memory_space<vmem>>, %arg3: memref<2x1x512xf32, #tpu.memory_space<vmem>>, %arg4: memref<16x32xf32, #tpu.memory_space<vmem>>, %arg5: memref<16x1xf32, #tpu.memory_space<vmem>>, %arg6: memref<16x32xf32, #tpu.memory_space<vmem>>, %arg7: memref<16x1xf32, #tpu.memory_space<vmem>>, %arg8: memref<1x16x16xf32, #tpu.memory_space<vmem>>, %arg9: memref<1x16x1xf32, #tpu.memory_space<vmem>>, %arg10: memref<1x16x144xf32, #tpu.memory_space<vmem>>, %arg11: memref<1x16x1xf32, #tpu.memory_space<vmem>>, %arg12: memref<1x16x16xf32, #tpu.memory_space<vmem>>, %arg13: memref<1x16x1xf32, #tpu.memory_space<vmem>>, %arg14: memref<1x8x32xf32, #tpu.memory_space<vmem>>, %arg15: memref<1x8x1xf32, #tpu.memory_space<vmem>>, %arg16: memref<1x16x8xf32, #tpu.memory_space<vmem>>, %arg17: memref<1x16x1xf32, #tpu.memory_space<vmem>>, %arg18: memref<32x32xf32, #tpu.memory_space<vmem>>, %arg19: memref<32x1xf32, #tpu.memory_space<vmem>>, %arg20: memref<1x32x512xf32, #tpu.memory_space<vmem>>) attributes {dimension_semantics = [#tpu.dimension_semantics<parallel>], iteration_bounds = array<i64: 1>, scalar_prefetch = 0 : i64, scratch_operands = 0 : i64, tpu.core_type = #tpu.core_type<tc>, window_params = [{transform_indices = @transform_0, window_bounds = array<i64: 1, 32, 512>}, {pipeline_mode = #tpu.pipeline_mode<synchronous>, transform_indices = @transform_1, window_bounds = array<i64: 9, 1, 512>}, {pipeline_mode = #tpu.pipeline_mode<synchronous>, transform_indices = @transform_2, window_bounds = array<i64: 2, 1, 512>}, {pipeline_mode = #tpu.pipeline_mode<synchronous>, transform_indices = @transform_3, window_bounds = array<i64: 16, 32>}, {pipeline_mode = #tpu.pipeline_mode<synchronous>, transform_indices = @transform_4, window_bounds = array<i64: 16, 1>}, {pipeline_mode = #tpu.pipeline_mode<synchronous>, transform_indices = @transform_5, window_bounds = array<i64: 16, 32>}, {pipeline_mode = #tpu.pipeline_mode<synchronous>, transform_indices = @transform_6, window_bounds = array<i64: 16, 1>}, {pipeline_mode = #tpu.pipeline_mode<synchronous>, transform_indices = @transform_7, window_bounds = array<i64: 1, 16, 16>}, {pipeline_mode = #tpu.pipeline_mode<synchronous>, transform_indices = @transform_8, window_bounds = array<i64: 1, 16, 1>}, {pipeline_mode = #tpu.pipeline_mode<synchronous>, transform_indices = @transform_9, window_bounds = array<i64: 1, 16, 144>}, {pipeline_mode = #tpu.pipeline_mode<synchronous>, transform_indices = @transform_10, window_bounds = array<i64: 1, 16, 1>}, {pipeline_mode = #tpu.pipeline_mode<synchronous>, transform_indices = @transform_11, window_bounds = array<i64: 1, 16, 16>}, {pipeline_mode = #tpu.pipeline_mode<synchronous>, transform_indices = @transform_12, window_bounds = array<i64: 1, 16, 1>}, {pipeline_mode = #tpu.pipeline_mode<synchronous>, transform_indices = @transform_13, window_bounds = array<i64: 1, 8, 32>}, {pipeline_mode = #tpu.pipeline_mode<synchronous>, transform_indices = @transform_14, window_bounds = array<i64: 1, 8, 1>}, {pipeline_mode = #tpu.pipeline_mode<synchronous>, transform_indices = @transform_15, window_bounds = array<i64: 1, 16, 8>}, {pipeline_mode = #tpu.pipeline_mode<synchronous>, transform_indices = @transform_16, window_bounds = array<i64: 1, 16, 1>}, {pipeline_mode = #tpu.pipeline_mode<synchronous>, transform_indices = @transform_17, window_bounds = array<i64: 32, 32>}, {pipeline_mode = #tpu.pipeline_mode<synchronous>, transform_indices = @transform_18, window_bounds = array<i64: 32, 1>}, {transform_indices = @transform_19, window_bounds = array<i64: 1, 32, 512>}]} {
    %c0 = arith.constant 0 : index
    %c0_0 = arith.constant 0 : index
    %c0_1 = arith.constant 0 : index
    %0 = vector.load %arg1[%c0, %c0_0, %c0_1] : memref<1x32x512xf32, #tpu.memory_space<vmem>>, vector<1x32x512xf32>
    %1 = vector.shape_cast %0 : vector<1x32x512xf32> to vector<32x512xf32>
    %c0_2 = arith.constant 0 : index
    %c0_3 = arith.constant 0 : index
    %2 = vector.load %arg4[%c0_2, %c0_3] : memref<16x32xf32, #tpu.memory_space<vmem>>, vector<16x32xf32>
    %cst = arith.constant dense<0.000000e+00> : vector<16x512xf32>
    %3 = tpu.matmul %2, %1, %cst {dimension_numbers = #tpu.dot_dimension_numbers<[1], [0], [0], [1], [0, 0, 1, 1], [], []>} : vector<16x32xf32>, vector<32x512xf32>, vector<16x512xf32> -> vector<16x512xf32>
    %c0_4 = arith.constant 0 : index
    %c0_5 = arith.constant 0 : index
    %4 = vector.load %arg5[%c0_4, %c0_5] : memref<16x1xf32, #tpu.memory_space<vmem>>, vector<16x1xf32>
    %5 = vector.broadcast %4 : vector<16x1xf32> to vector<16x512xf32>
    %6 = arith.addf %3, %5 : vector<16x512xf32>
    %cst_6 = arith.constant 0.000000e+00 : f32
    %7 = vector.broadcast %cst_6 : f32 to vector<16x512xf32>
    %8 = arith.subf %7, %6 : vector<16x512xf32>
    %9 = math.exp %8 : vector<16x512xf32>
    %cst_7 = arith.constant 1.000000e+00 : f32
    %10 = vector.broadcast %cst_7 : f32 to vector<16x512xf32>
    %11 = arith.addf %10, %9 : vector<16x512xf32>
    %12 = tpu.reciprocal %11 {approx = true} : vector<16x512xf32> -> vector<16x512xf32>
    %13 = arith.mulf %6, %12 : vector<16x512xf32>
    %c0_8 = arith.constant 0 : index
    %c0_9 = arith.constant 0 : index
    %14 = vector.load %arg6[%c0_8, %c0_9] : memref<16x32xf32, #tpu.memory_space<vmem>>, vector<16x32xf32>
    %cst_10 = arith.constant dense<0.000000e+00> : vector<16x512xf32>
    %15 = tpu.matmul %14, %1, %cst_10 {dimension_numbers = #tpu.dot_dimension_numbers<[1], [0], [0], [1], [0, 0, 1, 1], [], []>} : vector<16x32xf32>, vector<32x512xf32>, vector<16x512xf32> -> vector<16x512xf32>
    %c0_11 = arith.constant 0 : index
    %c0_12 = arith.constant 0 : index
    %16 = vector.load %arg7[%c0_11, %c0_12] : memref<16x1xf32, #tpu.memory_space<vmem>>, vector<16x1xf32>
    %17 = vector.broadcast %16 : vector<16x1xf32> to vector<16x512xf32>
    %18 = arith.addf %15, %17 : vector<16x512xf32>
    %cst_13 = arith.constant 0.000000e+00 : f32
    %19 = vector.broadcast %cst_13 : f32 to vector<16x512xf32>
    %20 = arith.subf %19, %18 : vector<16x512xf32>
    %21 = math.exp %20 : vector<16x512xf32>
    %cst_14 = arith.constant 1.000000e+00 : f32
    %22 = vector.broadcast %cst_14 : f32 to vector<16x512xf32>
    %23 = arith.addf %22, %21 : vector<16x512xf32>
    %24 = tpu.reciprocal %23 {approx = true} : vector<16x512xf32> -> vector<16x512xf32>
    %25 = arith.mulf %18, %24 : vector<16x512xf32>
    %c0_15 = arith.constant 0 : index
    %c0_16 = arith.constant 0 : index
    %c0_17 = arith.constant 0 : index
    %26 = vector.load %arg8[%c0_15, %c0_16, %c0_17] : memref<1x16x16xf32, #tpu.memory_space<vmem>>, vector<1x16x16xf32>
    %27 = vector.shape_cast %26 : vector<1x16x16xf32> to vector<16x16xf32>
    %cst_18 = arith.constant dense<0.000000e+00> : vector<16x512xf32>
    %28 = tpu.matmul %27, %13, %cst_18 {dimension_numbers = #tpu.dot_dimension_numbers<[1], [0], [0], [1], [0, 0, 1, 1], [], []>} : vector<16x16xf32>, vector<16x512xf32>, vector<16x512xf32> -> vector<16x512xf32>
    %c0_19 = arith.constant 0 : index
    %c0_20 = arith.constant 0 : index
    %c0_21 = arith.constant 0 : index
    %29 = vector.load %arg9[%c0_19, %c0_20, %c0_21] : memref<1x16x1xf32, #tpu.memory_space<vmem>>, vector<1x16x1xf32>
    %30 = vector.shape_cast %29 : vector<1x16x1xf32> to vector<16x1xf32>
    %31 = vector.broadcast %30 : vector<16x1xf32> to vector<16x512xf32>
    %32 = arith.addf %28, %31 : vector<16x512xf32>
    %cst_22 = arith.constant 0.000000e+00 : f32
    %33 = vector.broadcast %cst_22 : f32 to vector<16x512xf32>
    %34 = arith.subf %33, %32 : vector<16x512xf32>
    %35 = math.exp %34 : vector<16x512xf32>
    %cst_23 = arith.constant 1.000000e+00 : f32
    %36 = vector.broadcast %cst_23 : f32 to vector<16x512xf32>
    %37 = arith.addf %36, %35 : vector<16x512xf32>
    %38 = tpu.reciprocal %37 {approx = true} : vector<16x512xf32> -> vector<16x512xf32>
    %39 = arith.mulf %32, %38 : vector<16x512xf32>
    %c17_i32 = arith.constant 17 : i32
    %40 = tpu.dynamic_rotate %39 by %c17_i32 dim 1 : vector<16x512xf32>, i32 -> vector<16x512xf32>
    %c0_24 = arith.constant 0 : index
    %c0_25 = arith.constant 0 : index
    %c0_26 = arith.constant 0 : index
    %41 = vector.load %arg2[%c0_24, %c0_25, %c0_26] : memref<9x1x512xf32, #tpu.memory_space<vmem>>, vector<1x1x512xf32>
    %42 = vector.shape_cast %41 : vector<1x1x512xf32> to vector<1x512xf32>
    %43 = vector.broadcast %42 : vector<1x512xf32> to vector<16x512xf32>
    %44 = arith.mulf %40, %43 : vector<16x512xf32>
    %c16_i32 = arith.constant 16 : i32
    %45 = tpu.dynamic_rotate %39 by %c16_i32 dim 1 : vector<16x512xf32>, i32 -> vector<16x512xf32>
    %c1 = arith.constant 1 : index
    %c0_27 = arith.constant 0 : index
    %c0_28 = arith.constant 0 : index
    %46 = vector.load %arg2[%c1, %c0_27, %c0_28] : memref<9x1x512xf32, #tpu.memory_space<vmem>>, vector<1x1x512xf32>
    %47 = vector.shape_cast %46 : vector<1x1x512xf32> to vector<1x512xf32>
    %48 = vector.broadcast %47 : vector<1x512xf32> to vector<16x512xf32>
    %49 = arith.mulf %45, %48 : vector<16x512xf32>
    %c15_i32 = arith.constant 15 : i32
    %50 = tpu.dynamic_rotate %39 by %c15_i32 dim 1 : vector<16x512xf32>, i32 -> vector<16x512xf32>
    %c2 = arith.constant 2 : index
    %c0_29 = arith.constant 0 : index
    %c0_30 = arith.constant 0 : index
    %51 = vector.load %arg2[%c2, %c0_29, %c0_30] : memref<9x1x512xf32, #tpu.memory_space<vmem>>, vector<1x1x512xf32>
    %52 = vector.shape_cast %51 : vector<1x1x512xf32> to vector<1x512xf32>
    %53 = vector.broadcast %52 : vector<1x512xf32> to vector<16x512xf32>
    %54 = arith.mulf %50, %53 : vector<16x512xf32>
    %c1_i32 = arith.constant 1 : i32
    %55 = tpu.dynamic_rotate %39 by %c1_i32 dim 1 : vector<16x512xf32>, i32 -> vector<16x512xf32>
    %c3 = arith.constant 3 : index
    %c0_31 = arith.constant 0 : index
    %c0_32 = arith.constant 0 : index
    %56 = vector.load %arg2[%c3, %c0_31, %c0_32] : memref<9x1x512xf32, #tpu.memory_space<vmem>>, vector<1x1x512xf32>
    %57 = vector.shape_cast %56 : vector<1x1x512xf32> to vector<1x512xf32>
    %58 = vector.broadcast %57 : vector<1x512xf32> to vector<16x512xf32>
    %59 = arith.mulf %55, %58 : vector<16x512xf32>
    %c4 = arith.constant 4 : index
    %c0_33 = arith.constant 0 : index
    %c0_34 = arith.constant 0 : index
    %60 = vector.load %arg2[%c4, %c0_33, %c0_34] : memref<9x1x512xf32, #tpu.memory_space<vmem>>, vector<1x1x512xf32>
    %61 = vector.shape_cast %60 : vector<1x1x512xf32> to vector<1x512xf32>
    %62 = vector.broadcast %61 : vector<1x512xf32> to vector<16x512xf32>
    %63 = arith.mulf %39, %62 : vector<16x512xf32>
    %c511_i32 = arith.constant 511 : i32
    %64 = tpu.dynamic_rotate %39 by %c511_i32 dim 1 : vector<16x512xf32>, i32 -> vector<16x512xf32>
    %c5 = arith.constant 5 : index
    %c0_35 = arith.constant 0 : index
    %c0_36 = arith.constant 0 : index
    %65 = vector.load %arg2[%c5, %c0_35, %c0_36] : memref<9x1x512xf32, #tpu.memory_space<vmem>>, vector<1x1x512xf32>
    %66 = vector.shape_cast %65 : vector<1x1x512xf32> to vector<1x512xf32>
    %67 = vector.broadcast %66 : vector<1x512xf32> to vector<16x512xf32>
    %68 = arith.mulf %64, %67 : vector<16x512xf32>
    %c497_i32 = arith.constant 497 : i32
    %69 = tpu.dynamic_rotate %39 by %c497_i32 dim 1 : vector<16x512xf32>, i32 -> vector<16x512xf32>
    %c6 = arith.constant 6 : index
    %c0_37 = arith.constant 0 : index
    %c0_38 = arith.constant 0 : index
    %70 = vector.load %arg2[%c6, %c0_37, %c0_38] : memref<9x1x512xf32, #tpu.memory_space<vmem>>, vector<1x1x512xf32>
    %71 = vector.shape_cast %70 : vector<1x1x512xf32> to vector<1x512xf32>
    %72 = vector.broadcast %71 : vector<1x512xf32> to vector<16x512xf32>
    %73 = arith.mulf %69, %72 : vector<16x512xf32>
    %c496_i32 = arith.constant 496 : i32
    %74 = tpu.dynamic_rotate %39 by %c496_i32 dim 1 : vector<16x512xf32>, i32 -> vector<16x512xf32>
    %c7 = arith.constant 7 : index
    %c0_39 = arith.constant 0 : index
    %c0_40 = arith.constant 0 : index
    %75 = vector.load %arg2[%c7, %c0_39, %c0_40] : memref<9x1x512xf32, #tpu.memory_space<vmem>>, vector<1x1x512xf32>
    %76 = vector.shape_cast %75 : vector<1x1x512xf32> to vector<1x512xf32>
    %77 = vector.broadcast %76 : vector<1x512xf32> to vector<16x512xf32>
    %78 = arith.mulf %74, %77 : vector<16x512xf32>
    %c495_i32 = arith.constant 495 : i32
    %79 = tpu.dynamic_rotate %39 by %c495_i32 dim 1 : vector<16x512xf32>, i32 -> vector<16x512xf32>
    %c8 = arith.constant 8 : index
    %c0_41 = arith.constant 0 : index
    %c0_42 = arith.constant 0 : index
    %80 = vector.load %arg2[%c8, %c0_41, %c0_42] : memref<9x1x512xf32, #tpu.memory_space<vmem>>, vector<1x1x512xf32>
    %81 = vector.shape_cast %80 : vector<1x1x512xf32> to vector<1x512xf32>
    %82 = vector.broadcast %81 : vector<1x512xf32> to vector<16x512xf32>
    %83 = arith.mulf %79, %82 : vector<16x512xf32>
    %84 = tpu.concatenate %44, %49, %54, %59, %63, %68, %73, %78, %83 in 0 : vector<16x512xf32>, vector<16x512xf32>, vector<16x512xf32>, vector<16x512xf32>, vector<16x512xf32>, vector<16x512xf32>, vector<16x512xf32>, vector<16x512xf32>, vector<16x512xf32> -> vector<144x512xf32>
    %c0_43 = arith.constant 0 : index
    %c0_44 = arith.constant 0 : index
    %c0_45 = arith.constant 0 : index
    %85 = vector.load %arg10[%c0_43, %c0_44, %c0_45] : memref<1x16x144xf32, #tpu.memory_space<vmem>>, vector<1x16x144xf32>
    %86 = vector.shape_cast %85 : vector<1x16x144xf32> to vector<16x144xf32>
    %cst_46 = arith.constant dense<0.000000e+00> : vector<16x512xf32>
    %87 = tpu.matmul %86, %84, %cst_46 {dimension_numbers = #tpu.dot_dimension_numbers<[1], [0], [0], [1], [0, 0, 1, 1], [], []>} : vector<16x144xf32>, vector<144x512xf32>, vector<16x512xf32> -> vector<16x512xf32>
    %c0_47 = arith.constant 0 : index
    %c0_48 = arith.constant 0 : index
    %c0_49 = arith.constant 0 : index
    %88 = vector.load %arg11[%c0_47, %c0_48, %c0_49] : memref<1x16x1xf32, #tpu.memory_space<vmem>>, vector<1x16x1xf32>
    %89 = vector.shape_cast %88 : vector<1x16x1xf32> to vector<16x1xf32>
    %90 = vector.broadcast %89 : vector<16x1xf32> to vector<16x512xf32>
    %91 = arith.addf %87, %90 : vector<16x512xf32>
    %cst_50 = arith.constant 0.000000e+00 : f32
    %92 = vector.broadcast %cst_50 : f32 to vector<16x512xf32>
    %93 = arith.maximumf %91, %92 : vector<16x512xf32>
    %c0_51 = arith.constant 0 : index
    %c0_52 = arith.constant 0 : index
    %c0_53 = arith.constant 0 : index
    %94 = vector.load %arg12[%c0_51, %c0_52, %c0_53] : memref<1x16x16xf32, #tpu.memory_space<vmem>>, vector<1x16x16xf32>
    %95 = vector.shape_cast %94 : vector<1x16x16xf32> to vector<16x16xf32>
    %cst_54 = arith.constant dense<0.000000e+00> : vector<16x512xf32>
    %96 = tpu.matmul %95, %39, %cst_54 {dimension_numbers = #tpu.dot_dimension_numbers<[1], [0], [0], [1], [0, 0, 1, 1], [], []>} : vector<16x16xf32>, vector<16x512xf32>, vector<16x512xf32> -> vector<16x512xf32>
    %c0_55 = arith.constant 0 : index
    %c0_56 = arith.constant 0 : index
    %c0_57 = arith.constant 0 : index
    %97 = vector.load %arg13[%c0_55, %c0_56, %c0_57] : memref<1x16x1xf32, #tpu.memory_space<vmem>>, vector<1x16x1xf32>
    %98 = vector.shape_cast %97 : vector<1x16x1xf32> to vector<16x1xf32>
    %99 = vector.broadcast %98 : vector<16x1xf32> to vector<16x512xf32>
    %100 = arith.addf %96, %99 : vector<16x512xf32>
    %101 = tpu.concatenate %93, %39 in 0 : vector<16x512xf32>, vector<16x512xf32> -> vector<32x512xf32>
    %c0_58 = arith.constant 0 : index
    %c0_59 = arith.constant 0 : index
    %c0_60 = arith.constant 0 : index
    %102 = vector.load %arg14[%c0_58, %c0_59, %c0_60] : memref<1x8x32xf32, #tpu.memory_space<vmem>>, vector<1x8x32xf32>
    %103 = vector.shape_cast %102 : vector<1x8x32xf32> to vector<8x32xf32>
    %cst_61 = arith.constant dense<0.000000e+00> : vector<8x512xf32>
    %104 = tpu.matmul %103, %101, %cst_61 {dimension_numbers = #tpu.dot_dimension_numbers<[1], [0], [0], [1], [0, 0, 1, 1], [], []>} : vector<8x32xf32>, vector<32x512xf32>, vector<8x512xf32> -> vector<8x512xf32>
    %c0_62 = arith.constant 0 : index
    %c0_63 = arith.constant 0 : index
    %c0_64 = arith.constant 0 : index
    %105 = vector.load %arg15[%c0_62, %c0_63, %c0_64] : memref<1x8x1xf32, #tpu.memory_space<vmem>>, vector<1x8x1xf32>
    %106 = vector.shape_cast %105 : vector<1x8x1xf32> to vector<8x1xf32>
    %107 = vector.broadcast %106 : vector<8x1xf32> to vector<8x512xf32>
    %108 = arith.addf %104, %107 : vector<8x512xf32>
    %cst_65 = arith.constant 0.000000e+00 : f32
    %109 = vector.broadcast %cst_65 : f32 to vector<8x512xf32>
    %110 = arith.maximumf %108, %109 : vector<8x512xf32>
    %c0_66 = arith.constant 0 : index
    %c0_67 = arith.constant 0 : index
    %c0_68 = arith.constant 0 : index
    %111 = vector.load %arg16[%c0_66, %c0_67, %c0_68] : memref<1x16x8xf32, #tpu.memory_space<vmem>>, vector<1x16x8xf32>
    %112 = vector.shape_cast %111 : vector<1x16x8xf32> to vector<16x8xf32>
    %cst_69 = arith.constant dense<0.000000e+00> : vector<16x512xf32>
    %113 = tpu.matmul %112, %110, %cst_69 {dimension_numbers = #tpu.dot_dimension_numbers<[1], [0], [0], [1], [0, 0, 1, 1], [], []>} : vector<16x8xf32>, vector<8x512xf32>, vector<16x512xf32> -> vector<16x512xf32>
    %c0_70 = arith.constant 0 : index
    %c0_71 = arith.constant 0 : index
    %c0_72 = arith.constant 0 : index
    %114 = vector.load %arg17[%c0_70, %c0_71, %c0_72] : memref<1x16x1xf32, #tpu.memory_space<vmem>>, vector<1x16x1xf32>
    %115 = vector.shape_cast %114 : vector<1x16x1xf32> to vector<16x1xf32>
    %116 = vector.broadcast %115 : vector<16x1xf32> to vector<16x512xf32>
    %117 = arith.addf %113, %116 : vector<16x512xf32>
    %cst_73 = arith.constant 0.000000e+00 : f32
    %118 = vector.broadcast %cst_73 : f32 to vector<16x512xf32>
    %c0_74 = arith.constant 0 : index
    %c0_75 = arith.constant 0 : index
    %c0_76 = arith.constant 0 : index
    %119 = vector.load %arg3[%c0_74, %c0_75, %c0_76] : memref<2x1x512xf32, #tpu.memory_space<vmem>>, vector<1x1x512xf32>
    %120 = vector.shape_cast %119 : vector<1x1x512xf32> to vector<1x512xf32>
    %cst_77 = arith.constant 0.000000e+00 : f32
    %121 = vector.broadcast %cst_77 : f32 to vector<1x512xf32>
    %122 = arith.cmpf ogt, %120, %121 : vector<1x512xf32>
    %cst_78 = arith.constant -1.000000e+30 : f32
    %123 = vector.shape_cast %122 : vector<1x512xi1> to vector<1x512xi1>
    %124 = vector.broadcast %123 : vector<1x512xi1> to vector<16x512xi1>
    %125 = vector.broadcast %cst_78 : f32 to vector<16x512xf32>
    %126 = arith.select %124, %117, %125 : vector<16x512xi1>, vector<16x512xf32>
    %cst_79 = arith.constant dense<0xFF800000> : vector<16xf32>
    %127 = vector.multi_reduction <maximumf>, %126, %cst_79 [1] : vector<16x512xf32> to vector<16xf32>
    %128 = vector.shape_cast %127 : vector<16xf32> to vector<16x1xf32>
    %129 = vector.broadcast %128 : vector<16x1xf32> to vector<16x512xf32>
    %130 = vector.broadcast %120 : vector<1x512xf32> to vector<16x512xf32>
    %131 = arith.mulf %129, %130 : vector<16x512xf32>
    %132 = arith.addf %118, %131 : vector<16x512xf32>
    %c1_80 = arith.constant 1 : index
    %c0_81 = arith.constant 0 : index
    %c0_82 = arith.constant 0 : index
    %133 = vector.load %arg3[%c1_80, %c0_81, %c0_82] : memref<2x1x512xf32, #tpu.memory_space<vmem>>, vector<1x1x512xf32>
    %134 = vector.shape_cast %133 : vector<1x1x512xf32> to vector<1x512xf32>
    %cst_83 = arith.constant 0.000000e+00 : f32
    %135 = vector.broadcast %cst_83 : f32 to vector<1x512xf32>
    %136 = arith.cmpf ogt, %134, %135 : vector<1x512xf32>
    %cst_84 = arith.constant -1.000000e+30 : f32
    %137 = vector.shape_cast %136 : vector<1x512xi1> to vector<1x512xi1>
    %138 = vector.broadcast %137 : vector<1x512xi1> to vector<16x512xi1>
    %139 = vector.broadcast %cst_84 : f32 to vector<16x512xf32>
    %140 = arith.select %138, %117, %139 : vector<16x512xi1>, vector<16x512xf32>
    %cst_85 = arith.constant dense<0xFF800000> : vector<16xf32>
    %141 = vector.multi_reduction <maximumf>, %140, %cst_85 [1] : vector<16x512xf32> to vector<16xf32>
    %142 = vector.shape_cast %141 : vector<16xf32> to vector<16x1xf32>
    %143 = vector.broadcast %142 : vector<16x1xf32> to vector<16x512xf32>
    %144 = vector.broadcast %134 : vector<1x512xf32> to vector<16x512xf32>
    %145 = arith.mulf %143, %144 : vector<16x512xf32>
    %146 = arith.addf %132, %145 : vector<16x512xf32>
    %147 = arith.subf %117, %146 : vector<16x512xf32>
    %148 = math.exp %147 : vector<16x512xf32>
    %cst_86 = arith.constant 0.000000e+00 : f32
    %149 = vector.broadcast %cst_86 : f32 to vector<16x512xf32>
    %c0_87 = arith.constant 0 : index
    %c0_88 = arith.constant 0 : index
    %c0_89 = arith.constant 0 : index
    %150 = vector.load %arg3[%c0_87, %c0_88, %c0_89] : memref<2x1x512xf32, #tpu.memory_space<vmem>>, vector<1x1x512xf32>
    %151 = vector.shape_cast %150 : vector<1x1x512xf32> to vector<1x512xf32>
    %152 = vector.broadcast %151 : vector<1x512xf32> to vector<16x512xf32>
    %153 = arith.mulf %148, %152 : vector<16x512xf32>
    %cst_90 = arith.constant dense<0.000000e+00> : vector<16xf32>
    %154 = vector.multi_reduction <add>, %153, %cst_90 [1] : vector<16x512xf32> to vector<16xf32>
    %155 = vector.shape_cast %154 : vector<16xf32> to vector<16x1xf32>
    %156 = vector.broadcast %155 : vector<16x1xf32> to vector<16x512xf32>
    %157 = vector.broadcast %151 : vector<1x512xf32> to vector<16x512xf32>
    %158 = arith.mulf %156, %157 : vector<16x512xf32>
    %159 = arith.addf %149, %158 : vector<16x512xf32>
    %c1_91 = arith.constant 1 : index
    %c0_92 = arith.constant 0 : index
    %c0_93 = arith.constant 0 : index
    %160 = vector.load %arg3[%c1_91, %c0_92, %c0_93] : memref<2x1x512xf32, #tpu.memory_space<vmem>>, vector<1x1x512xf32>
    %161 = vector.shape_cast %160 : vector<1x1x512xf32> to vector<1x512xf32>
    %162 = vector.broadcast %161 : vector<1x512xf32> to vector<16x512xf32>
    %163 = arith.mulf %148, %162 : vector<16x512xf32>
    %cst_94 = arith.constant dense<0.000000e+00> : vector<16xf32>
    %164 = vector.multi_reduction <add>, %163, %cst_94 [1] : vector<16x512xf32> to vector<16xf32>
    %165 = vector.shape_cast %164 : vector<16xf32> to vector<16x1xf32>
    %166 = vector.broadcast %165 : vector<16x1xf32> to vector<16x512xf32>
    %167 = vector.broadcast %161 : vector<1x512xf32> to vector<16x512xf32>
    %168 = arith.mulf %166, %167 : vector<16x512xf32>
    %169 = arith.addf %159, %168 : vector<16x512xf32>
    %170 = tpu.reciprocal %169 {approx = true} : vector<16x512xf32> -> vector<16x512xf32>
    %171 = arith.mulf %148, %170 : vector<16x512xf32>
    %172 = arith.addf %13, %93 : vector<16x512xf32>
    %173 = arith.mulf %171, %100 : vector<16x512xf32>
    %174 = arith.addf %172, %173 : vector<16x512xf32>
    %175 = tpu.concatenate %174, %25 in 0 : vector<16x512xf32>, vector<16x512xf32> -> vector<32x512xf32>
    %c0_95 = arith.constant 0 : index
    %c0_96 = arith.constant 0 : index
    %176 = vector.load %arg18[%c0_95, %c0_96] : memref<32x32xf32, #tpu.memory_space<vmem>>, vector<32x32xf32>
    %cst_97 = arith.constant dense<0.000000e+00> : vector<32x512xf32>
    %177 = tpu.matmul %176, %175, %cst_97 {dimension_numbers = #tpu.dot_dimension_numbers<[1], [0], [0], [1], [0, 0, 1, 1], [], []>} : vector<32x32xf32>, vector<32x512xf32>, vector<32x512xf32> -> vector<32x512xf32>
    %c0_98 = arith.constant 0 : index
    %c0_99 = arith.constant 0 : index
    %178 = vector.load %arg19[%c0_98, %c0_99] : memref<32x1xf32, #tpu.memory_space<vmem>>, vector<32x1xf32>
    %179 = vector.broadcast %178 : vector<32x1xf32> to vector<32x512xf32>
    %180 = arith.addf %177, %179 : vector<32x512xf32>
    %cst_100 = arith.constant 0.000000e+00 : f32
    %181 = vector.broadcast %cst_100 : f32 to vector<32x512xf32>
    %182 = arith.subf %181, %180 : vector<32x512xf32>
    %183 = math.exp %182 : vector<32x512xf32>
    %cst_101 = arith.constant 1.000000e+00 : f32
    %184 = vector.broadcast %cst_101 : f32 to vector<32x512xf32>
    %185 = arith.addf %184, %183 : vector<32x512xf32>
    %186 = tpu.reciprocal %185 {approx = true} : vector<32x512xf32> -> vector<32x512xf32>
    %187 = arith.mulf %180, %186 : vector<32x512xf32>
    %c0_102 = arith.constant 0 : index
    %c0_103 = arith.constant 0 : index
    %c0_104 = arith.constant 0 : index
    %188 = vector.load %arg20[%c0_102, %c0_103, %c0_104] : memref<1x32x512xf32, #tpu.memory_space<vmem>>, vector<1x32x512xf32>
    %189 = vector.shape_cast %188 : vector<1x32x512xf32> to vector<32x512xf32>
    %190 = vector.shape_cast %187 : vector<32x512xf32> to vector<1x32x512xf32>
    tpu.vector_store %arg20[%c0_102, %c0_103, %c0_104], %190 {strides = array<i32>} : memref<1x32x512xf32, #tpu.memory_space<vmem>>, vector<1x32x512xf32>,
    return
  }
  func.func @transform_0(%arg0: i32) -> (i32, i32, i32) {
    %c0_i32 = arith.constant 0 : i32
    %c0_i32_0 = arith.constant 0 : i32
    %c0_i32_1 = arith.constant 0 : i32
    return %arg0, %c0_i32, %c0_i32_0 : i32, i32, i32
  }
  func.func @transform_1(%arg0: i32) -> (i32, i32, i32) {
    %c0_i32 = arith.constant 0 : i32
    %c0_i32_0 = arith.constant 0 : i32
    %c0_i32_1 = arith.constant 0 : i32
    %c0_i32_2 = arith.constant 0 : i32
    return %c0_i32, %c0_i32_0, %c0_i32_1 : i32, i32, i32
  }
  func.func @transform_2(%arg0: i32) -> (i32, i32, i32) {
    %c0_i32 = arith.constant 0 : i32
    %c0_i32_0 = arith.constant 0 : i32
    %c0_i32_1 = arith.constant 0 : i32
    %c0_i32_2 = arith.constant 0 : i32
    return %c0_i32, %c0_i32_0, %c0_i32_1 : i32, i32, i32
  }
  func.func @transform_3(%arg0: i32) -> (i32, i32) {
    %c0_i32 = arith.constant 0 : i32
    %c0_i32_0 = arith.constant 0 : i32
    %c0_i32_1 = arith.constant 0 : i32
    return %c0_i32, %c0_i32_0 : i32, i32
  }
  func.func @transform_4(%arg0: i32) -> (i32, i32) {
    %c0_i32 = arith.constant 0 : i32
    %c0_i32_0 = arith.constant 0 : i32
    %c0_i32_1 = arith.constant 0 : i32
    return %c0_i32, %c0_i32_0 : i32, i32
  }
  func.func @transform_5(%arg0: i32) -> (i32, i32) {
    %c0_i32 = arith.constant 0 : i32
    %c0_i32_0 = arith.constant 0 : i32
    %c0_i32_1 = arith.constant 0 : i32
    return %c0_i32, %c0_i32_0 : i32, i32
  }
  func.func @transform_6(%arg0: i32) -> (i32, i32) {
    %c0_i32 = arith.constant 0 : i32
    %c0_i32_0 = arith.constant 0 : i32
    %c0_i32_1 = arith.constant 0 : i32
    return %c0_i32, %c0_i32_0 : i32, i32
  }
  func.func @transform_7(%arg0: i32) -> (i32, i32, i32) {
    %c0_i32 = arith.constant 0 : i32
    %c0_i32_0 = arith.constant 0 : i32
    %c0_i32_1 = arith.constant 0 : i32
    %c0_i32_2 = arith.constant 0 : i32
    return %c0_i32, %c0_i32_0, %c0_i32_1 : i32, i32, i32
  }
  func.func @transform_8(%arg0: i32) -> (i32, i32, i32) {
    %c0_i32 = arith.constant 0 : i32
    %c0_i32_0 = arith.constant 0 : i32
    %c0_i32_1 = arith.constant 0 : i32
    %c0_i32_2 = arith.constant 0 : i32
    return %c0_i32, %c0_i32_0, %c0_i32_1 : i32, i32, i32
  }
  func.func @transform_9(%arg0: i32) -> (i32, i32, i32) {
    %c0_i32 = arith.constant 0 : i32
    %c0_i32_0 = arith.constant 0 : i32
    %c0_i32_1 = arith.constant 0 : i32
    %c0_i32_2 = arith.constant 0 : i32
    return %c0_i32, %c0_i32_0, %c0_i32_1 : i32, i32, i32
  }
  func.func @transform_10(%arg0: i32) -> (i32, i32, i32) {
    %c0_i32 = arith.constant 0 : i32
    %c0_i32_0 = arith.constant 0 : i32
    %c0_i32_1 = arith.constant 0 : i32
    %c0_i32_2 = arith.constant 0 : i32
    return %c0_i32, %c0_i32_0, %c0_i32_1 : i32, i32, i32
  }
  func.func @transform_11(%arg0: i32) -> (i32, i32, i32) {
    %c0_i32 = arith.constant 0 : i32
    %c0_i32_0 = arith.constant 0 : i32
    %c0_i32_1 = arith.constant 0 : i32
    %c0_i32_2 = arith.constant 0 : i32
    return %c0_i32, %c0_i32_0, %c0_i32_1 : i32, i32, i32
  }
  func.func @transform_12(%arg0: i32) -> (i32, i32, i32) {
    %c0_i32 = arith.constant 0 : i32
    %c0_i32_0 = arith.constant 0 : i32
    %c0_i32_1 = arith.constant 0 : i32
    %c0_i32_2 = arith.constant 0 : i32
    return %c0_i32, %c0_i32_0, %c0_i32_1 : i32, i32, i32
  }
  func.func @transform_13(%arg0: i32) -> (i32, i32, i32) {
    %c0_i32 = arith.constant 0 : i32
    %c0_i32_0 = arith.constant 0 : i32
    %c0_i32_1 = arith.constant 0 : i32
    %c0_i32_2 = arith.constant 0 : i32
    return %c0_i32, %c0_i32_0, %c0_i32_1 : i32, i32, i32
  }
  func.func @transform_14(%arg0: i32) -> (i32, i32, i32) {
    %c0_i32 = arith.constant 0 : i32
    %c0_i32_0 = arith.constant 0 : i32
    %c0_i32_1 = arith.constant 0 : i32
    %c0_i32_2 = arith.constant 0 : i32
    return %c0_i32, %c0_i32_0, %c0_i32_1 : i32, i32, i32
  }
  func.func @transform_15(%arg0: i32) -> (i32, i32, i32) {
    %c0_i32 = arith.constant 0 : i32
    %c0_i32_0 = arith.constant 0 : i32
    %c0_i32_1 = arith.constant 0 : i32
    %c0_i32_2 = arith.constant 0 : i32
    return %c0_i32, %c0_i32_0, %c0_i32_1 : i32, i32, i32
  }
  func.func @transform_16(%arg0: i32) -> (i32, i32, i32) {
    %c0_i32 = arith.constant 0 : i32
    %c0_i32_0 = arith.constant 0 : i32
    %c0_i32_1 = arith.constant 0 : i32
    %c0_i32_2 = arith.constant 0 : i32
    return %c0_i32, %c0_i32_0, %c0_i32_1 : i32, i32, i32
  }
  func.func @transform_17(%arg0: i32) -> (i32, i32) {
    %c0_i32 = arith.constant 0 : i32
    %c0_i32_0 = arith.constant 0 : i32
    %c0_i32_1 = arith.constant 0 : i32
    return %c0_i32, %c0_i32_0 : i32, i32
  }
  func.func @transform_18(%arg0: i32) -> (i32, i32) {
    %c0_i32 = arith.constant 0 : i32
    %c0_i32_0 = arith.constant 0 : i32
    %c0_i32_1 = arith.constant 0 : i32
    return %c0_i32, %c0_i32_0 : i32, i32
  }
  func.func @transform_19(%arg0: i32) -> (i32, i32, i32) {
    %c0_i32 = arith.constant 0 : i32
    %c0_i32_0 = arith.constant 0 : i32
    %c0_i32_1 = arith.constant 0 : i32
    return %arg0, %c0_i32, %c0_i32_0 : i32, i32, i32
  }
}

</mosaic_0001>

<bundles_post_ra>
// kernel: cot3_forward.1
= control target key start
LH: loop header
LB: loop body
LE: loop exit
PB: predicated region body
PF: predicated region fallthrough
CT: control target
= control target key end

     0   :  { %v4434_v3 = vmov 0.0   ;;  %v4432_v8 = vmov 0   ;;  %vm92_vm0 = vcmask 261120   ;;  %vm537_vm1 = vcmask 130048   ;;  %s2940_s28 = smov 16   ;;  %s2941_s29 = smov 15   ;;  %s4408_s0 = inlined_call_operand.vmem [shape: f32[1,32,512], index: 0, kind: input, shape index: {}]   ;;  %s4409_s4 = inlined_call_operand.vmem [shape: f32[16,1], index: 4, kind: input, shape index: {}]   ;;  %s4410_s3 = inlined_call_operand.vmem [shape: f32[16,32], index: 3, kind: input, shape index: {}]   ;;  %s4411_s5 = inlined_call_operand.vmem [shape: f32[16,32], index: 5, kind: input, shape index: {}]   ;;  %s4412_s8 = inlined_call_operand.vmem [shape: f32[1,16,1], index: 8, kind: input, shape index: {}]   ;;  %s4413_s7 = inlined_call_operand.vmem [shape: f32[1,16,16], index: 7, kind: input, shape index: {}]   ;;  %s4414_s1 = inlined_call_operand.vmem [shape: f32[9,1,512], index: 1, kind: input, shape index: {}]   ;;  %s4415_s9 = inlined_call_operand.vmem [shape: f32[1,16,144], index: 9, kind: input, shape index: {}]   ;;  %s4416_s10 = inlined_call_operand.vmem [shape: f32[1,16,1], index: 10, kind: input, shape index: {}]   ;;  %s4417_s14 = inlined_call_operand.vmem [shape: f32[1,8,1], index: 14, kind: input, shape index: {}]   ;;  %s4418_s16 = inlined_call_operand.vmem [shape: f32[1,16,1], index: 16, kind: input, shape index: {}]   ;;  %s4419_s11 = inlined_call_operand.vmem [shape: f32[1,16,16], index: 11, kind: input, shape index: {}]   ;;  %s4420_s13 = inlined_call_operand.vmem [shape: f32[1,8,32], index: 13, kind: input, shape index: {}]   ;;  %s4421_s15 = inlined_call_operand.vmem [shape: f32[1,16,8], index: 15, kind: input, shape index: {}]   ;;  %s4422_s2 = inlined_call_operand.vmem [shape: f32[2,1,512], index: 2, kind: input, shape index: {}]   ;;  %s4423_s6 = inlined_call_operand.vmem [shape: f32[16,1], index: 6, kind: input, shape index: {}]   ;;  %s4424_s12 = inlined_call_operand.vmem [shape: f32[1,16,1], index: 12, kind: input, shape index: {}]   ;;  %s4425_s18 = inlined_call_operand.vmem [shape: f32[32,1], index: 18, kind: input, shape index: {}]   ;;  %s4426_s17 = inlined_call_operand.vmem [shape: f32[32,32], index: 17, kind: input, shape index: {}]   ;;  %s4427_s19 = inlined_call_operand.vmem [shape: f32[1,32,512], index: 19, kind: output, shape index: {}]  }
   0x1   :  { %4458 = sst [smem:[#allocation21_spill]] %s4408_s0  ;;  %163 = vmatprep.mubr.f32.mxu0 %v4434_v3  ;;  %240 = vmatprep.mubr.f32.mxu1 %v4434_v3  ;;  %v525_v32 = vld [vmem:[%s4412_s8] sm:$0xff]  ;;  %v526_v33 = vld [vmem:[%s4412_s8 + $0x8] sm:$0xff]  ;;  %s2942_s0 = smov 1   ;;  %vm1754_vm10 = vcmask 64512  }
   0x2   :  { %4459 = sst [smem:[#allocation22_spill]] %s4409_s4  ;;  %s4462_s20 = sld [smem:[#allocation21_spill]]  ;;  %2743 = vset.pattern.permute.xlu0 %v4432_v8  ;;  %2744 = vset.pattern.permute.xlu1 %v4432_v8 }
   0x3   :  { %4460 = sst [smem:[#allocation23_spill]] %s4410_s3  ;;  %s4463_s23 = sld [smem:[#allocation22_spill]]  ;;  %529 = vperm.xlu1 %2744, %v525_v32  }
   0x4   :  { %4461 = sst [smem:[#allocation24_spill]] %s4411_s5  ;;  %s4464_s5 = sld [smem:[#allocation23_spill]] }
   0x5   :  { %s4465_s30 = sld [smem:[#allocation24_spill]]  ;;  %s2944_s21 = smov 113  }
   0x6   :  { %s2945_s4 = smov 112   ;;  %s2946_s22 = smov 111  }
   0x7   :  { %534 = vperm.xlu1 %2744, %v526_v33  }
   0x8   :  { %v63_v0 = vld [vmem:[%s4462_s20 + $0x8] sm:$0xff]  ;;  %v65_v2 = vld [vmem:[%s4462_s20 + $0x18] sm:$0xff]  ;;  %v62_v6 = vld [vmem:[%s4462_s20] sm:$0xff] }
   0x9   :  { %v67_v1 = vld [vmem:[%s4462_s20 + $0x28] sm:$0xff]  ;;  %v69_v5 = vld [vmem:[%s4462_s20 + $0x38] sm:$0xff]  ;;  %v66_v7 = vld [vmem:[%s4462_s20 + $0x20] sm:$0xff] }
   0xa   :  { %v2581_v4 = vpack.c.bf16 %v67_v1, %v63_v0  ;;  %v2589_v9 = vpack.c.bf16 %v69_v5, %v65_v2  ;;  %v2583_v10 = vpack.c.bf16 %v66_v7, %v62_v6  ;;  %v64_v11 = vld [vmem:[%s4462_s20 + $0x10] sm:$0xff]  ;;  %v71_v13 = vld [vmem:[%s4462_s20 + $0x48] sm:$0xff]  ;;  %v73_v16 = vld [vmem:[%s4462_s20 + $0x58] sm:$0xff] }
   0xb   :  { %v68_v12 = vld [vmem:[%s4462_s20 + $0x30] sm:$0xff]  ;;  %v75_v15 = vld [vmem:[%s4462_s20 + $0x68] sm:$0xff]  ;;  %v77_v17 = vld [vmem:[%s4462_s20 + $0x78] sm:$0xff] }
   0xc   :  { %2582 = vmatprep.subr.bf16.mxu0 %v2581_v4  ;;  %v2591_v14 = vpack.c.bf16 %v68_v12, %v64_v11  ;;  %2590 = vmatprep.subr.bf16.mxu1 %v2589_v9  ;;  %v2585_v18 = vpack.c.bf16 %v75_v15, %v71_v13  ;;  %v2593_v19 = vpack.c.bf16 %v77_v17, %v73_v16  ;;  %v70_v20 = vld [vmem:[%s4462_s20 + $0x40] sm:$0xff]  ;;  %v72_v22 = vld [vmem:[%s4462_s20 + $0x50] sm:$0xff]  ;;  %v81_v28 = vld [vmem:[%s4463_s23 + $0x8] sm:$0xff] }
   0xd   :  { %2584 = vmatpush1.bf16.msra.mxu0 %v2583_v10  ;;  %v74_v21 = vld [vmem:[%s4462_s20 + $0x60] sm:$0xff]  ;;  %v76_v24 = vld [vmem:[%s4462_s20 + $0x70] sm:$0xff]  ;;  %v79_v29 = vld [vmem:[%s4464_s5 + $0x8] sm:$0xff]  ;;  %s2939_s20 = smov 17  }
   0xe   :  { %2592 = vmatpush1.bf16.msra.mxu1 %v2591_v14  ;;  %v2587_v23 = vpack.c.bf16 %v74_v21, %v70_v20  ;;  %2586 = vmatprep.subr.bf16.mxu0 %v2585_v18  ;;  %v2595_v25 = vpack.c.bf16 %v76_v24, %v72_v22  ;;  %v80_v26 = vld [vmem:[%s4463_s23] sm:$0xff]  ;;  %v302_v31 = vld [vmem:[%s4465_s30 + $0x8] sm:$0xff] }
   0xf   :  { %2594 = vmatprep.subr.bf16.mxu1 %v2593_v19  ;;  %84 = vperm.xlu0 %2743, %v80_v26   ;;  %v78_v27 = vld [vmem:[%s4464_s5] sm:$0xff] }
  0x10   :  { %v301_v30 = vld [vmem:[%s4465_s30] sm:$0xff]  ;;  %s2943_s30 = smov 127  }
  0x11   :  { %2588 = vmatpush1.bf16.msra.mxu0 %v2587_v23 }
  0x12   :  { %2596 = vmatpush1.bf16.msra.mxu1 %v2595_v25  ;;  %2598 = vmatprep.subr.bf16.mxu0 %v2581_v4 }
  0x13   :  { %2606 = vmatprep.subr.bf16.mxu1 %v2589_v9  ;;  %89 = vperm.xlu0 %2743, %v81_v28  }
  0x14   :  { %2538 = vmatmul.mubr.msk.f32.vlgmr.msra.gmra.mrb[0].mxu0 %vm92_vm0, %v78_v27 }
  0x15   :  { %2540 = vmatmul.mubr.msk.f32.vlgmr.msra.gmra.mrb[0].mxu1 %vm92_vm0, %v78_v27  ;;  %169 = vmatprep.mubr.f32.mxu0 %v4434_v3 }
  0x16   :  { %246 = vmatprep.mubr.f32.mxu1 %v4434_v3  ;;  %2600 = vmatpush1.bf16.msra.mxu0 %v2583_v10 }
  0x17   :  { %2608 = vmatpush1.bf16.msra.mxu1 %v2591_v14  ;;  %2602 = vmatprep.subr.bf16.mxu0 %v2585_v18 }
  0x18   :  { %2539 = vmatmul.mubr.msk.f32.gmra.mrb[2].mxu0 %vm92_vm0, %v79_v29  ;;  %2610 = vmatprep.subr.bf16.mxu1 %v2593_v19 }
  0x19   :  { %2541 = vmatmul.mubr.msk.f32.gmra.mrb[2].mxu1 %vm92_vm0, %v79_v29  ;;  %385 = vmatprep.mubr.f32.mxu0 %v4434_v3 }
  0x1a   :  { %2604 = vmatpush1.bf16.msra.mxu0 %v2587_v23  ;;  %462 = vmatprep.mubr.f32.mxu1 %v4434_v3 }
  0x1b   :  { %2612 = vmatpush1.bf16.msra.mxu1 %v2595_v25 }
  0x1d   :  { %2542 = vmatmul.mubr.msk.f32.vlgmr.msra.gmra.mrb[4].mxu0 %vm92_vm0, %v301_v30 }
  0x1e   :  { %2544 = vmatmul.mubr.msk.f32.vlgmr.msra.gmra.mrb[4].mxu1 %vm92_vm0, %v301_v30  ;;  %391 = vmatprep.mubr.f32.mxu0 %v4434_v3 }
  0x1f   :  { %468 = vmatprep.mubr.f32.mxu1 %v4434_v3 }
  0x21   :  { %2543 = vmatmul.mubr.msk.f32.gmra.mrb[6].mxu0 %vm92_vm0, %v302_v31 }
  0x22   :  { %2545 = vmatmul.mubr.msk.f32.gmra.mrb[6].mxu1 %vm92_vm0, %v302_v31  ;;  %608 = vmatprep.mubr.f32.mxu0 %v4434_v3 }
  0x23   :  { %685 = vmatprep.mubr.f32.mxu1 %v4434_v3 }
  0x8e   :  { %v85_v34 = vpop.permute.xlu0 %84 }
  0x92   :  { %v90_v45 = vpop.permute.xlu0 %89 }
  0xe7   :  { %v165_v35 = vpop.f32.mrb[0].mxu0 }
  0xe8   :  { %v3139_v36 = vadd.f32 %v165_v35, %v85_v34  ;;  %v242_v37 = vpop.f32.mrb[0].mxu1  ;;  %v167_v38 = vpop.f32.mrb[1].mxu0 }
  0xe9   :  { %v3141_v39 = vadd.f32 %v242_v37, %v85_v34  ;;  %v3143_v40 = vadd.f32 %v167_v38, %v85_v34  ;;  %v244_v41 = vpop.f32.mrb[1].mxu1 }
  0xea   :  { %v253_v42 = vsub.f32 0.0, %v3139_v36  ;;  %v3146_v43 = vadd.f32 %v244_v41, %v85_v34 }
  0xeb   :  { %v255_v44 = vsub.f32 0.0, %v3141_v39  ;;  %v254_v46 = vsub.f32 0.0, %v3143_v40  ;;  %v171_v47 = vpop.f32.mrb[2].mxu0 }
  0xec   :  { %v261_v48 = vmul.f32 1.442695, %v253_v42  ;;  %v256_v49 = vsub.f32 0.0, %v3146_v43  ;;  %v172_v50 = vadd.f32 %v171_v47, %v90_v45  ;;  %v248_v51 = vpop.f32.mrb[2].mxu1  ;;  %v173_v52 = vpop.f32.mrb[3].mxu0 }
  0xed   :  { %v265_v53 = vmul.f32 1.442695, %v255_v44  ;;  %v263_v54 = vmul.f32 1.442695, %v254_v46  ;;  %v249_v55 = vadd.f32 %v248_v51, %v90_v45  ;;  %v174_v56 = vadd.f32 %v173_v52, %v90_v45  ;;  %v250_v57 = vpop.f32.mrb[3].mxu1  ;;  %v3207_v52 = vpop.permute.xlu1 %529 }
  0xee   :  { %2745 = vpow2.f32 %v261_v48  ;;  %v267_v58 = vmul.f32 1.442695, %v256_v49  ;;  %v257_v59 = vsub.f32 0.0, %v172_v50  ;;  %v251_v60 = vadd.f32 %v250_v57, %v90_v45 }
  0xef   :  { %2747 = vpow2.f32 %v265_v53  ;;  %v259_v61 = vsub.f32 0.0, %v249_v55  ;;  %v258_v62 = vsub.f32 0.0, %v174_v56 }
  0xf0   :  { %2749 = vpow2.f32 %v263_v54  ;;  %v269_v63 = vmul.f32 1.442695, %v257_v59  ;;  %v260_v0 = vsub.f32 0.0, %v251_v60  ;;  %v3191_v44 = vpop.f32.mrb[4].mxu0 }
  0xf1   :  { %2751 = vpow2.f32 %v267_v58  ;;  %v273_v1 = vmul.f32 1.442695, %v259_v61  ;;  %v271_v2 = vmul.f32 1.442695, %v258_v62  ;;  %4474 = vst [vmem:[#allocation10_spill] sm:$0xff] %v3191_v44  ;;  %v3193_v45 = vpop.f32.mrb[4].mxu1  ;;  %v3215_v61 = vpop.permute.xlu1 %534 }
  0xf2   :  { %2753 = vpow2.f32 %v269_v63  ;;  %v275_v4 = vmul.f32 1.442695, %v260_v0  ;;  %4475 = vst [vmem:[#allocation11_spill] sm:$0xff] %v3193_v45  ;;  %v3195_v46 = vpop.f32.mrb[5].mxu0  ;;  %v3197_v47 = vpop.f32.mrb[5].mxu1 }
  0xf3   :  { %2755 = vpow2.f32 %v273_v1  ;;  %4476 = vst [vmem:[#allocation12_spill] sm:$0xff] %v3195_v46  ;;  %4477 = vst [vmem:[#allocation13_spill] sm:$0xff] %v3197_v47 }
  0xf4   :  { %2757 = vpow2.f32 %v271_v2  ;;  %v3199_v48 = vpop.f32.mrb[6].mxu0 }
  0xf5   :  { %2759 = vpow2.f32 %v275_v4  ;;  %4478 = vst [vmem:[#allocation14_spill] sm:$0xff] %v3199_v48  ;;  %v3201_v49 = vpop.f32.mrb[6].mxu1 }
  0xf6   :  { %4479 = vst [vmem:[#allocation15_spill] sm:$0xff] %v3201_v49  ;;  %v3205_v51 = vpop.f32.mrb[7].mxu1 }
  0xf7   :  { %4481 = vst [vmem:[#allocation17_spill] sm:$0xff] %v3205_v51 }
  0xf8   :  { %v2746_v5 = vpop.eup %2745 }
  0xf9   :  { %v2748_v6 = vpop.eup %2747  ;;  %v277_v7 = vadd.f32 1.0, %v2746_v5 }
  0xfa   :  { %v2750_v9 = vpop.eup %2749  ;;  %v279_v10 = vadd.f32 1.0, %v2748_v6 }
  0xfb   :  { %v2752_v11 = vpop.eup %2751  ;;  %2761 = vrcp.f32 %v277_v7  ;;  %v278_v12 = vadd.f32 1.0, %v2750_v9 }
  0xfc   :  { %v2754_v13 = vpop.eup %2753  ;;  %2763 = vrcp.f32 %v279_v10  ;;  %v280_v14 = vadd.f32 1.0, %v2752_v11 }
  0xfd   :  { %v2756_v15 = vpop.eup %2755  ;;  %2765 = vrcp.f32 %v278_v12  ;;  %v281_v16 = vadd.f32 1.0, %v2754_v13 }
  0xfe   :  { %v2758_v17 = vpop.eup %2757  ;;  %2767 = vrcp.f32 %v280_v14  ;;  %v283_v18 = vadd.f32 1.0, %v2756_v15 }
  0xff   :  { %v2760_v19 = vpop.eup %2759  ;;  %2769 = vrcp.f32 %v281_v16  ;;  %v282_v20 = vadd.f32 1.0, %v2758_v17  ;;  %v762_v17 = vlaneseq }
 0x100   :  { %2771 = vrcp.f32 %v283_v18  ;;  %v284_v21 = vadd.f32 1.0, %v2760_v19 }
 0x101   :  { %2773 = vrcp.f32 %v282_v20 }
 0x102   :  { %2775 = vrcp.f32 %v284_v21  ;;  %v3224_v21 = vshrl.u32 %v762_v17, 7 }
 0x105   :  { %v2762_v22 = vpop.eup %2761 }
 0x106   :  { %v2764_v23 = vpop.eup %2763  ;;  %v3161_v34 = vmul.f32 %v2762_v22, %v3139_v36  ;;  %v3227_v22 = vsub.s32 0, %v3224_v21 }
 0x107   :  { %v2766_v24 = vpop.eup %2765  ;;  %v3169_v38 = vmul.f32 %v2764_v23, %v3141_v39  ;;  %v523_v39 = vld [vmem:[%s4413_s7] sm:$0xff] }
 0x108   :  { %v2768_v25 = vpop.eup %2767  ;;  %v3154_v31 = vmul.f32 %v2766_v24, %v3143_v40  ;;  %4470 = vst [vmem:[#allocation6_spill] sm:$0xff] %v3161_v34  ;;  %v3230_v24 = vsub.s32 2, %v3224_v21 }
 0x109   :  { %v2770_v26 = vpop.eup %2769  ;;  %v3164_v35 = vmul.f32 %v2768_v25, %v3146_v43  ;;  %4473 = vst [vmem:[#allocation9_spill] sm:$0xff] %v3169_v38  ;;  %v524_v43 = vld [vmem:[%s4413_s7 + $0x8] sm:$0xff]  ;;  %v3235_v25 = vld [vmem:[%s4414_s1 + $0x10] sm:$0xf] }
 0x10a   :  { %v2772_v27 = vpop.eup %2771  ;;  %v3151_v29 = vmul.f32 %v2770_v26, %v172_v50  ;;  %4467 = vst [vmem:[#allocation3_spill] sm:$0xff] %v3154_v31  ;;  %v3203_v50 = vpop.f32.mrb[7].mxu0 }
 0x10b   :  { %v2774_v28 = vpop.eup %2773  ;;  %v3156_v32 = vmul.f32 %v2772_v27, %v249_v55  ;;  %4471 = vst [vmem:[#allocation7_spill] sm:$0xff] %v3164_v35  ;;  %4480 = vst [vmem:[#allocation16_spill] sm:$0xff] %v3203_v50 }
 0x10c   :  { %4466 = vst [vmem:[#allocation2_spill] sm:$0xff] %v3151_v29  ;;  %v2776_v30 = vpop.eup %2775  ;;  %v3158_v33 = vmul.f32 %v2774_v28, %v174_v56  ;;  %v2615_v40 = vpack.c.bf16 %v3151_v29, %v3161_v34  ;;  %v977_v28 = vrot.slane %v3235_v25, %v3227_v22  ;;  %v3514_v29 = vsub.s32 3, %v3224_v21 }
 0x10d   :  { %4468 = vst [vmem:[#allocation4_spill] sm:$0xff] %v3156_v32  ;;  %v3166_v37 = vmul.f32 %v2776_v30, %v251_v60  ;;  %v2619_v36 = vpack.c.bf16 %v3156_v32, %v3169_v38 }
 0x10e   :  { %4469 = vst [vmem:[#allocation5_spill] sm:$0xff] %v3158_v33  ;;  %v2613_v41 = vpack.c.bf16 %v3158_v33, %v3154_v31 }
 0x10f   :  { %4472 = vst [vmem:[#allocation8_spill] sm:$0xff] %v3166_v37  ;;  %v2617_v42 = vpack.c.bf16 %v3166_v37, %v3164_v35  ;;  %v3506_v37 = vsub.s32 1, %v3224_v21 }
 0x110   :  { %2614 = vmatprep.subr.bf16.mxu0 %v2613_v41 }
 0x111   :  { %2618 = vmatprep.subr.bf16.mxu1 %v2617_v42  ;;  %2616 = vmatpush1.bf16.msra.mxu0 %v2615_v40  ;;  %v985_v40 = vrot.slane %v3235_v25, %v3230_v24 }
 0x112   :  { %2620 = vmatpush1.bf16.msra.mxu1 %v2619_v36 }
 0x114   :  { %2546 = vmatmul.mubr.msk.f32.vlgmr.msra.gmra.mrb[8].mxu0 %vm537_vm1, %v523_v39 }
 0x115   :  { %2548 = vmatmul.mubr.msk.f32.vlgmr.msra.gmra.mrb[8].mxu1 %vm537_vm1, %v523_v39  ;;  %614 = vmatprep.mubr.f32.mxu0 %v4434_v3 }
 0x116   :  { %691 = vmatprep.mubr.f32.mxu1 %v4434_v3 }
 0x118   :  { %2547 = vmatmul.mubr.msk.f32.gmra.mrb[10].mxu0 %vm537_vm1, %v524_v43 }
 0x119   :  { %2549 = vmatmul.mubr.msk.f32.gmra.mrb[10].mxu1 %vm537_vm1, %v524_v43 }
 0x1e7   :  { %v610_v53 = vpop.f32.mrb[8].mxu0 }
 0x1e8   :  { %v611_v54 = vadd.f32 %v610_v53, %v3207_v52  ;;  %v687_v55 = vpop.f32.mrb[8].mxu1  ;;  %v3210_v56 = vpop.f32.mrb[9].mxu0 }
 0x1e9   :  { %v688_v57 = vadd.f32 %v687_v55, %v3207_v52  ;;  %v3213_v58 = vpop.f32.mrb[9].mxu1 }
 0x1ea   :  { %v698_v59 = vsub.f32 0.0, %v611_v54 }
 0x1eb   :  { %v700_v60 = vsub.f32 0.0, %v688_v57  ;;  %v616_v62 = vpop.f32.mrb[10].mxu0 }
 0x1ec   :  { %v706_v63 = vmul.f32 1.442695, %v698_v59  ;;  %v617_v0 = vadd.f32 %v616_v62, %v3215_v61  ;;  %v693_v1 = vpop.f32.mrb[10].mxu1  ;;  %v3218_v2 = vpop.f32.mrb[11].mxu0  ;;  %v3500_v62 = vand.u32 127, %v762_v17 }
 0x1ed   :  { %v710_v4 = vmul.f32 1.442695, %v700_v60  ;;  %v694_v5 = vadd.f32 %v693_v1, %v3215_v61  ;;  %v3221_v6 = vpop.f32.mrb[11].mxu1  ;;  %v773_v60 = vld [vmem:[%s4414_s1] sm:$0xf] }
 0x1ee   :  { %2777 = vpow2.f32 %v706_v63  ;;  %v702_v7 = vsub.f32 0.0, %v617_v0  ;;  %v613_v63 = vadd.f32 %v3210_v56, %v3207_v52  ;;  %vm764_vm2 = vcmp.lt.s32.totalorder %v3500_v62, 17 }
 0x1ef   :  { %2779 = vpow2.f32 %v710_v4  ;;  %v704_v9 = vsub.f32 0.0, %v694_v5  ;;  %v619_v4 = vadd.f32 %v3218_v2, %v3215_v61  ;;  %v782_v33 = vrot.slane %v773_v60, %v3506_v37 }
 0x1f0   :  { %v714_v10 = vmul.f32 1.442695, %v702_v7  ;;  %v699_v1 = vsub.f32 0.0, %v613_v63  ;;  %v786_v38 = vrot.slane %v773_v60, %v3230_v24  ;;  %v778_v21 = vrot.slane %v773_v60, %v3227_v22 }
 0x1f1   :  { %v718_v11 = vmul.f32 1.442695, %v704_v9  ;;  %v703_v7 = vsub.f32 0.0, %v619_v4  ;;  %v696_v9 = vadd.f32 %v3221_v6, %v3215_v61  ;;  %v790_v44 = vrot.slane %v773_v60, %v3514_v29 }
 0x1f2   :  { %2781 = vpow2.f32 %v714_v10  ;;  %vm819_vm3 = vcmp.lt.s32.totalorder %v3500_v62, 16  ;;  %vm875_vm4 = vcmp.lt.s32.totalorder %v3500_v62, 15  ;;  %vm931_vm5 = vcmp.lt.s32.totalorder %v3500_v62, 1 }
 0x1f3   :  { %2783 = vpow2.f32 %v718_v11  ;;  %v705_v2 = vsub.f32 0.0, %v696_v9  ;;  %vm1018_vm6 = vcmp.lt.s32.totalorder %v3500_v62, 127  ;;  %vm1074_vm7 = vcmp.lt.s32.totalorder %v3500_v62, 113 }
 0x1f4   :  { %vm1130_vm8 = vcmp.lt.s32.totalorder %v3500_v62, 112  ;;  %vm1186_vm9 = vcmp.lt.s32.totalorder %v3500_v62, 111  ;;  %v1229_v62 = vld [vmem:[%s4415_s9 + $0x18] sm:$0xff] }
 0x1f5   :  { %v720_v61 = vmul.f32 1.442695, %v705_v2 }
 0x1f8   :  { %v2778_v12 = vpop.eup %2777 }
 0x1f9   :  { %v2780_v13 = vpop.eup %2779  ;;  %v722_v14 = vadd.f32 1.0, %v2778_v12 }
 0x1fa   :  { %v724_v15 = vadd.f32 1.0, %v2780_v13 }
 0x1fb   :  { %2785 = vrcp.f32 %v722_v14 }
 0x1fc   :  { %v2782_v16 = vpop.eup %2781  ;;  %2787 = vrcp.f32 %v724_v15 }
 0x1fd   :  { %v2784_v18 = vpop.eup %2783  ;;  %v726_v19 = vadd.f32 1.0, %v2782_v16 }
 0x1fe   :  { %v728_v20 = vadd.f32 1.0, %v2784_v18 }
 0x1ff   :  { %2789 = vrcp.f32 %v726_v19 }
 0x200   :  { %2791 = vrcp.f32 %v728_v20 }
 0x205   :  { %v2786_v23 = vpop.eup %2785 }
 0x206   :  { %v2788_v26 = vpop.eup %2787  ;;  %v3237_v27 = vmul.f32 %v2786_v23, %v611_v54 }
 0x207   :  { %v3243_v41 = vmul.f32 %v2788_v26, %v688_v57 }
 0x208   :  { %746 = vrot.lane.b32.xlu0 %v3237_v27, %s2939_s20  ;;  %v3256_v43 = vmul.f32 %v977_v28, %v3237_v27 }
 0x209   :  { %v2790_v30 = vpop.eup %2789  ;;  %v3266_v55 = vmul.f32 %v985_v40, %v3243_v41 }
 0x20a   :  { %v2792_v42 = vpop.eup %2791  ;;  %v3247_v36 = vmul.f32 %v2790_v30, %v617_v0  ;;  %v690_v0 = vadd.f32 %v3213_v58, %v3207_v52  ;;  %v716_v58 = vmul.f32 1.442695, %v703_v7 }
 0x20b   :  { %v3249_v39 = vmul.f32 %v2792_v42, %v694_v5  ;;  %v708_v5 = vmul.f32 1.442695, %v699_v1 }
 0x20c   :  { %748 = vrot.lane.b32.xlu1 %v3247_v36, %s2939_s20  ;;  %754 = vrot.lane.b32.xlu0 %v3243_v41, %s2939_s20  ;;  %v3259_v53 = vmul.f32 %v977_v28, %v3247_v36  ;;  %v3263_v54 = vpack.c.bf16 %v3247_v36, %v3237_v27  ;;  %v701_v56 = vsub.f32 0.0, %v690_v0 }
 0x20d   :  { %v3269_v57 = vmul.f32 %v985_v40, %v3249_v39  ;;  %v3273_v59 = vpack.c.bf16 %v3249_v39, %v3243_v41  ;;  %2793 = vpow2.f32 %v708_v5  ;;  %v1585_v5 = vld [vmem:[%s4417_s14] sm:$0xff] }
 0x20e   :  { %4482 = vst [vmem:[#allocation18_spill] sm:$0xff] %v3263_v54  ;;  %v712_v52 = vmul.f32 1.442695, %v701_v56  ;;  %v1231_v56 = vld [vmem:[%s4416_s10 + $0x8] sm:$0xff] }
 0x20f   :  { %4483 = vst [vmem:[#allocation19_spill] sm:$0xff] %v3273_v59 }
 0x210   :  { %756 = vrot.lane.b32.xlu1 %v3249_v39, %s2939_s20  ;;  %803 = vrot.lane.b32.xlu0 %v3237_v27, %s2940_s28  ;;  %2795 = vpow2.f32 %v712_v52  ;;  %v1742_v52 = vld [vmem:[%s4418_s16] sm:$0xff] }
 0x211   :  { %2797 = vpow2.f32 %v716_v58  ;;  %v1743_v58 = vld [vmem:[%s4418_s16 + $0x8] sm:$0xff] }
 0x212   :  { %2799 = vpow2.f32 %v720_v61 }
 0x214   :  { %805 = vrot.lane.b32.xlu1 %v3247_v36, %s2940_s28  ;;  %811 = vrot.lane.b32.xlu0 %v3243_v41, %s2940_s28 }
 0x217   :  { %v2794_v6 = vpop.eup %2793 }
 0x218   :  { %813 = vrot.lane.b32.xlu1 %v3249_v39, %s2940_s28  ;;  %859 = vrot.lane.b32.xlu0 %v3237_v27, %s2941_s29  ;;  %v723_v11 = vadd.f32 1.0, %v2794_v6 }
 0x21a   :  { %v2796_v10 = vpop.eup %2795  ;;  %2801 = vrcp.f32 %v723_v11 }
 0x21b   :  { %v2798_v12 = vpop.eup %2797  ;;  %v725_v13 = vadd.f32 1.0, %v2796_v10 }
 0x21c   :  { %861 = vrot.lane.b32.xlu1 %v3247_v36, %s2941_s29  ;;  %867 = vrot.lane.b32.xlu0 %v3243_v41, %s2941_s29  ;;  %v727_v14 = vadd.f32 1.0, %v2798_v12  ;;  %v2800_v15 = vpop.eup %2799 }
 0x21d   :  { %2803 = vrcp.f32 %v725_v13  ;;  %v729_v16 = vadd.f32 1.0, %v2800_v15 }
 0x21e   :  { %2805 = vrcp.f32 %v727_v14 }
 0x21f   :  { %2807 = vrcp.f32 %v729_v16 }
 0x220   :  { %869 = vrot.lane.b32.xlu1 %v3249_v39, %s2941_s29  ;;  %915 = vrot.lane.b32.xlu0 %v3237_v27, %s2942_s0 }
 0x224   :  { %917 = vrot.lane.b32.xlu1 %v3247_v36, %s2942_s0  ;;  %923 = vrot.lane.b32.xlu0 %v3243_v41, %s2942_s0  ;;  %v2802_v18 = vpop.eup %2801 }
 0x225   :  { %v3343_v20 = vmul.f32 %v2802_v18, %v613_v63 }
 0x227   :  { %v2804_v19 = vpop.eup %2803 }
 0x228   :  { %925 = vrot.lane.b32.xlu1 %v3249_v39, %s2942_s0  ;;  %1002 = vrot.lane.b32.xlu0 %v3237_v27, %s2943_s30  ;;  %v2806_v23 = vpop.eup %2805  ;;  %v3349_v26 = vmul.f32 %v2804_v19, %v690_v0  ;;  %v1230_v0 = vld [vmem:[%s4416_s10] sm:$0xff] }
 0x229   :  { %v2808_v28 = vpop.eup %2807 }
 0x22a   :  { %v3357_v30 = vmul.f32 %v2808_v28, %v696_v9 }
 0x22c   :  { %1004 = vrot.lane.b32.xlu1 %v3247_v36, %s2943_s30  ;;  %1010 = vrot.lane.b32.xlu0 %v3243_v41, %s2943_s30 }
 0x230   :  { %1012 = vrot.lane.b32.xlu1 %v3249_v39, %s2943_s30  ;;  %1058 = vrot.lane.b32.xlu0 %v3237_v27, %s2944_s21 }
 0x234   :  { %1060 = vrot.lane.b32.xlu1 %v3247_v36, %s2944_s21  ;;  %1066 = vrot.lane.b32.xlu0 %v3243_v41, %s2944_s21 }
 0x238   :  { %1068 = vrot.lane.b32.xlu1 %v3249_v39, %s2944_s21  ;;  %1114 = vrot.lane.b32.xlu0 %v3237_v27, %s2945_s4 }
 0x23c   :  { %1116 = vrot.lane.b32.xlu1 %v3247_v36, %s2945_s4  ;;  %1122 = vrot.lane.b32.xlu0 %v3243_v41, %s2945_s4 }
 0x240   :  { %1124 = vrot.lane.b32.xlu1 %v3249_v39, %s2945_s4  ;;  %1170 = vrot.lane.b32.xlu0 %v3237_v27, %s2946_s22  ;;  %v3351_v27 = vmul.f32 %v2806_v23, %v619_v4 }
 0x244   :  { %1172 = vrot.lane.b32.xlu1 %v3247_v36, %s2946_s22  ;;  %1178 = vrot.lane.b32.xlu0 %v3243_v41, %s2946_s22  ;;  %v1227_v36 = vld [vmem:[%s4415_s9 + $0x8] sm:$0xff] }
 0x245   :  { %2558 = vmatprep.mubr.msk.f32.mxu0 %vm537_vm1, %v1227_v36  ;;  %2560 = vmatprep.mubr.msk.f32.mxu1 %vm537_vm1, %v1227_v36 }
 0x248   :  { %1180 = vrot.lane.b32.xlu1 %v3249_v39, %s2946_s22  ;;  %750 = vrot.lane.b32.xlu0 %v3343_v20, %s2939_s20 }
 0x24c   :  { %752 = vrot.lane.b32.xlu1 %v3351_v27, %s2939_s20  ;;  %758 = vrot.lane.b32.xlu0 %v3349_v26, %s2939_s20 }
 0x250   :  { %760 = vrot.lane.b32.xlu1 %v3357_v30, %s2939_s20  ;;  %807 = vrot.lane.b32.xlu0 %v3343_v20, %s2940_s28 }
 0x254   :  { %809 = vrot.lane.b32.xlu1 %v3351_v27, %s2940_s28  ;;  %815 = vrot.lane.b32.xlu0 %v3349_v26, %s2940_s28 }
 0x258   :  { %817 = vrot.lane.b32.xlu1 %v3357_v30, %s2940_s28  ;;  %863 = vrot.lane.b32.xlu0 %v3343_v20, %s2941_s29 }
 0x25c   :  { %865 = vrot.lane.b32.xlu1 %v3351_v27, %s2941_s29  ;;  %871 = vrot.lane.b32.xlu0 %v3349_v26, %s2941_s29 }
 0x260   :  { %873 = vrot.lane.b32.xlu1 %v3357_v30, %s2941_s29  ;;  %919 = vrot.lane.b32.xlu0 %v3343_v20, %s2942_s0 }
 0x264   :  { %921 = vrot.lane.b32.xlu1 %v3351_v27, %s2942_s0  ;;  %927 = vrot.lane.b32.xlu0 %v3349_v26, %s2942_s0 }
 0x268   :  { %929 = vrot.lane.b32.xlu1 %v3357_v30, %s2942_s0  ;;  %1006 = vrot.lane.b32.xlu0 %v3343_v20, %s2943_s30 }
 0x26c   :  { %1008 = vrot.lane.b32.xlu1 %v3351_v27, %s2943_s30  ;;  %1014 = vrot.lane.b32.xlu0 %v3349_v26, %s2943_s30 }
 0x270   :  { %1016 = vrot.lane.b32.xlu1 %v3357_v30, %s2943_s30  ;;  %1062 = vrot.lane.b32.xlu0 %v3343_v20, %s2944_s21 }
 0x274   :  { %1064 = vrot.lane.b32.xlu1 %v3351_v27, %s2944_s21  ;;  %1070 = vrot.lane.b32.xlu0 %v3349_v26, %s2944_s21 }
 0x278   :  { %1072 = vrot.lane.b32.xlu1 %v3357_v30, %s2944_s21  ;;  %1118 = vrot.lane.b32.xlu0 %v3343_v20, %s2945_s4 }
 0x27a   :  { %v3403_v41 = vpop.permute.xlu0 %746 }
 0x27c   :  { %1120 = vrot.lane.b32.xlu1 %v3351_v27, %s2945_s4  ;;  %1126 = vrot.lane.b32.xlu0 %v3349_v26, %s2945_s4 }
 0x27e   :  { %v3409_v40 = vpop.permute.xlu1 %748  ;;  %v3411_v42 = vpop.permute.xlu0 %754 }
 0x280   :  { %1128 = vrot.lane.b32.xlu1 %v3357_v30, %s2945_s4  ;;  %1174 = vrot.lane.b32.xlu0 %v3343_v20, %s2946_s22 }
 0x282   :  { %v3422_v39 = vpop.permute.xlu1 %756  ;;  %v3424_v63 = vpop.permute.xlu0 %803 }
 0x284   :  { %1176 = vrot.lane.b32.xlu1 %v3351_v27, %s2946_s22  ;;  %1182 = vrot.lane.b32.xlu0 %v3349_v26, %s2946_s22 }
 0x286   :  { %v3433_v1 = vpop.permute.xlu1 %805  ;;  %v3435_v4 = vpop.permute.xlu0 %811 }
 0x288   :  { %1184 = vrot.lane.b32.xlu1 %v3357_v30, %s2946_s22  ;;  %1234 = vperm.xlu0 %2743, %v1230_v0  }
 0x28a   :  { %v3445_v7 = vpop.permute.xlu1 %813  ;;  %v3447_v9 = vpop.permute.xlu0 %859 }
 0x28c   :  { %1239 = vperm.xlu1 %2744, %v1231_v56   ;;  %1588 = vperm.xlu0 %2743, %v1585_v5  }
 0x28e   :  { %v3455_v2 = vpop.permute.xlu1 %861  ;;  %v3457_v61 = vpop.permute.xlu0 %867 }
 0x290   :  { %1746 = vperm.xlu1 %2744, %v1742_v52   ;;  %1751 = vperm.xlu0 %2743, %v1743_v58  }
 0x292   :  { %v3459_v6 = vpop.permute.xlu1 %869  ;;  %v3461_v10 = vpop.permute.xlu0 %915 }
 0x296   :  { %v3463_v11 = vpop.permute.xlu1 %917  ;;  %v3465_v12 = vpop.permute.xlu0 %923 }
 0x29a   :  { %v3467_v13 = vpop.permute.xlu1 %925  ;;  %v3469_v14 = vpop.permute.xlu0 %1002 }
 0x29e   :  { %v3471_v15 = vpop.permute.xlu1 %1004  ;;  %v3473_v16 = vpop.permute.xlu0 %1010 }
 0x2a2   :  { %v3475_v18 = vpop.permute.xlu1 %1012  ;;  %v3477_v19 = vpop.permute.xlu0 %1058 }
 0x2a6   :  { %v3479_v23 = vpop.permute.xlu1 %1060  ;;  %v3481_v28 = vpop.permute.xlu0 %1066 }
 0x2aa   :  { %v3483_v36 = vpop.permute.xlu1 %1068  ;;  %v3485_v0 = vpop.permute.xlu0 %1114 }
 0x2ae   :  { %v3487_v56 = vpop.permute.xlu1 %1116  ;;  %v3489_v5 = vpop.permute.xlu0 %1122 }
 0x2b2   :  { %v3491_v52 = vpop.permute.xlu1 %1124  ;;  %v3493_v58 = vpop.permute.xlu0 %1170 }
 0x2b6   :  { %v3495_v8 = vpop.permute.xlu1 %1172  ;;  %v3497_v3 = vpop.permute.xlu0 %1178 }
 0x2b7   :  { %4484 = vst [vmem:[#allocation20_spill] sm:$0xff] %v3495_v8 }
 0x2ba   :  { %v3508_v32 = vpop.permute.xlu1 %1180  ;;  %v751_v35 = vpop.permute.xlu0 %750 }
 0x2bb   :  { %v767_v17 = vsel %vm764_vm2, %v751_v35, %v3411_v42  ;;  %v769_v31 = vsel %vm764_vm2, %v3403_v41, %v751_v35  ;;  %v2550_v35 = vld [vmem:[%s4414_s1 + $0x4] sm:$0xf] }
 0x2bc   :  { %v796_v51 = vmul.f32 %v782_v33, %v769_v31  ;;  %v797_v49 = vmul.f32 %v786_v38, %v767_v17 }
 0x2be   :  { %v753_v34 = vpop.permute.xlu1 %752  ;;  %v759_v47 = vpop.permute.xlu0 %758 }
 0x2bf   :  { %v768_v45 = vsel %vm764_vm2, %v753_v34, %v3422_v39  ;;  %v770_v46 = vsel %vm764_vm2, %v3409_v40, %v753_v34  ;;  %v765_v59 = vsel %vm764_vm2, %v3411_v42, %v759_v47  ;;  %v771_v34 = vsel %vm764_vm2, %v759_v47, %v3403_v41 }
 0x2c0   :  { %v800_v50 = vmul.f32 %v782_v33, %v770_v46  ;;  %v801_v48 = vmul.f32 %v786_v38, %v768_v45  ;;  %v838_v45 = vrot.slane %v2550_v35, %v3506_v37  ;;  %v842_v46 = vrot.slane %v2550_v35, %v3230_v24 }
 0x2c1   :  { %v795_v42 = vmul.f32 %v778_v21, %v771_v34  ;;  %v798_v47 = vmul.f32 %v790_v44, %v765_v59  ;;  %v834_v59 = vrot.slane %v2550_v35, %v3227_v22 }
 0x2c2   :  { %v2659_v54 = vpack.c.bf16 %v801_v48, %v797_v49  ;;  %v761_v8 = vpop.permute.xlu1 %760  ;;  %v808_v31 = vpop.permute.xlu0 %807  ;;  %v2621_v60 = vpack.c.bf16 %v800_v50, %v796_v51 }
 0x2c3   :  { %v766_v33 = vsel %vm764_vm2, %v3422_v39, %v761_v8  ;;  %v772_v38 = vsel %vm764_vm2, %v761_v8, %v3409_v40  ;;  %v822_v50 = vsel %vm819_vm3, %v808_v31, %v3435_v4  ;;  %v824_v51 = vsel %vm819_vm3, %v3424_v63, %v808_v31 }
 0x2c4   :  { %v799_v48 = vmul.f32 %v778_v21, %v772_v38  ;;  %v802_v49 = vmul.f32 %v790_v44, %v766_v33  ;;  %2622 = vmatprep.subr.bf16.mxu0 %v2621_v60  ;;  %v846_v21 = vrot.slane %v2550_v35, %v3514_v29  ;;  %v852_v34 = vmul.f32 %v838_v45, %v824_v51  ;;  %v2551_v38 = vld [vmem:[%s4414_s1 + $0x8] sm:$0xf] }
 0x2c5   :  { %v853_v60 = vmul.f32 %v842_v46, %v822_v50  ;;  %v894_v50 = vrot.slane %v2551_v38, %v3506_v37 }
 0x2c6   :  { %v2623_v41 = vpack.c.bf16 %v799_v48, %v795_v42  ;;  %v810_v39 = vpop.permute.xlu1 %809  ;;  %v816_v8 = vpop.permute.xlu0 %815  ;;  %v2657_v40 = vpack.c.bf16 %v802_v49, %v798_v47 }
 0x2c7   :  { %v823_v17 = vsel %vm819_vm3, %v810_v39, %v3445_v7  ;;  %v825_v44 = vsel %vm819_vm3, %v3433_v1, %v810_v39  ;;  %v820_v42 = vsel %vm819_vm3, %v3435_v4, %v816_v8  ;;  %v826_v47 = vsel %vm819_vm3, %v816_v8, %v3424_v63 }
 0x2c8   :  { %v856_v33 = vmul.f32 %v838_v45, %v825_v44  ;;  %v857_v31 = vmul.f32 %v842_v46, %v823_v17  ;;  %2624 = vmatpush1.bf16.msra.mxu0 %v2623_v41  ;;  %2658 = vmatprep.subr.bf16.mxu1 %v2657_v40  ;;  %v898_v63 = vrot.slane %v2551_v38, %v3230_v24 }
 0x2c9   :  { %2660 = vmatpush1.bf16.msra.mxu1 %v2659_v54  ;;  %v851_v51 = vmul.f32 %v834_v59, %v826_v47  ;;  %v854_v41 = vmul.f32 %v846_v21, %v820_v42 }
 0x2ca   :  { %v2663_v48 = vpack.c.bf16 %v857_v31, %v853_v60  ;;  %v818_v35 = vpop.permute.xlu1 %817  ;;  %v864_v45 = vpop.permute.xlu0 %863  ;;  %v2625_v46 = vpack.c.bf16 %v856_v33, %v852_v34  ;;  %v902_v60 = vrot.slane %v2551_v38, %v3514_v29 }
 0x2cb   :  { %v821_v49 = vsel %vm819_vm3, %v3445_v7, %v818_v35  ;;  %v827_v4 = vsel %vm819_vm3, %v818_v35, %v3433_v1  ;;  %v878_v8 = vsel %vm875_vm4, %v864_v45, %v3457_v61  ;;  %v880_v7 = vsel %vm875_vm4, %v3447_v9, %v864_v45  ;;  %v2552_v35 = vld [vmem:[%s4414_s1 + $0xc] sm:$0xf] }
 0x2cc   :  { %v855_v54 = vmul.f32 %v834_v59, %v827_v4  ;;  %v858_v39 = vmul.f32 %v846_v21, %v821_v49  ;;  %2626 = vmatprep.subr.bf16.mxu0 %v2625_v46  ;;  %v890_v21 = vrot.slane %v2551_v38, %v3227_v22  ;;  %v908_v33 = vmul.f32 %v894_v50, %v880_v7 }
 0x2cd   :  { %v909_v31 = vmul.f32 %v898_v63, %v878_v8 }
 0x2ce   :  { %v2627_v40 = vpack.c.bf16 %v855_v54, %v851_v51  ;;  %v866_v17 = vpop.permute.xlu1 %865  ;;  %v872_v1 = vpop.permute.xlu0 %871  ;;  %v2661_v44 = vpack.c.bf16 %v858_v39, %v854_v41  ;;  %v950_v51 = vrot.slane %v2552_v35, %v3506_v37 }
 0x2cf   :  { %v879_v34 = vsel %vm875_vm4, %v866_v17, %v3459_v6  ;;  %v881_v59 = vsel %vm875_vm4, %v3455_v2, %v866_v17  ;;  %v876_v45 = vsel %vm875_vm4, %v3457_v61, %v872_v1  ;;  %v882_v46 = vsel %vm875_vm4, %v872_v1, %v3447_v9 }
 0x2d0   :  { %v912_v42 = vmul.f32 %v894_v50, %v881_v59  ;;  %v913_v47 = vmul.f32 %v898_v63, %v879_v34  ;;  %2628 = vmatpush1.bf16.msra.mxu0 %v2627_v40  ;;  %2662 = vmatprep.subr.bf16.mxu1 %v2661_v44  ;;  %v954_v9 = vrot.slane %v2552_v35, %v3230_v24 }
 0x2d1   :  { %2664 = vmatpush1.bf16.msra.mxu1 %v2663_v48  ;;  %v907_v41 = vmul.f32 %v890_v21, %v882_v46  ;;  %v910_v54 = vmul.f32 %v902_v60, %v876_v45  ;;  %v981_v1 = vrot.slane %v3235_v25, %v3506_v37  ;;  %v946_v59 = vrot.slane %v2552_v35, %v3227_v22 }
 0x2d2   :  { %v2667_v49 = vpack.c.bf16 %v913_v47, %v909_v31  ;;  %v874_v38 = vpop.permute.xlu1 %873  ;;  %v920_v4 = vpop.permute.xlu0 %919  ;;  %v2629_v50 = vpack.c.bf16 %v912_v42, %v908_v33  ;;  %v2554_v47 = vld [vmem:[%s4414_s1 + $0x14] sm:$0xf] }
 0x2d3   :  { %v877_v63 = vsel %vm875_vm4, %v3459_v6, %v874_v38  ;;  %v883_v61 = vsel %vm875_vm4, %v874_v38, %v3455_v2  ;;  %v934_v8 = vsel %vm931_vm5, %v920_v4, %v3465_v12  ;;  %v936_v6 = vsel %vm931_vm5, %v3461_v10, %v920_v4 }
 0x2d4   :  { %v911_v48 = vmul.f32 %v890_v21, %v883_v61  ;;  %v914_v39 = vmul.f32 %v902_v60, %v877_v63  ;;  %2630 = vmatprep.subr.bf16.mxu0 %v2629_v50  ;;  %v958_v21 = vrot.slane %v2552_v35, %v3514_v29  ;;  %v964_v60 = vmul.f32 %v950_v51, %v936_v6 }
 0x2d5   :  { %v965_v33 = vmul.f32 %v954_v9, %v934_v8  ;;  %v989_v35 = vrot.slane %v3235_v25, %v3514_v29  ;;  %v999_v61 = vmul.f32 %v981_v1, %v3351_v27  ;;  %v995_v25 = vmul.f32 %v981_v1, %v3343_v20 }
 0x2d6   :  { %v2631_v7 = vpack.c.bf16 %v911_v48, %v907_v41  ;;  %v922_v40 = vpop.permute.xlu1 %921  ;;  %v928_v2 = vpop.permute.xlu0 %927  ;;  %v2665_v17 = vpack.c.bf16 %v914_v39, %v910_v54 }
 0x2d7   :  { %v935_v44 = vsel %vm931_vm5, %v922_v40, %v3467_v13  ;;  %v937_v34 = vsel %vm931_vm5, %v3463_v11, %v922_v40  ;;  %v932_v45 = vsel %vm931_vm5, %v3465_v12, %v928_v2  ;;  %v938_v46 = vsel %vm931_vm5, %v928_v2, %v3461_v10 }
 0x2d8   :  { %v968_v31 = vmul.f32 %v950_v51, %v937_v34  ;;  %v969_v42 = vmul.f32 %v954_v9, %v935_v44  ;;  %2632 = vmatpush1.bf16.msra.mxu0 %v2631_v7  ;;  %2666 = vmatprep.subr.bf16.mxu1 %v2665_v17  ;;  %v1037_v51 = vrot.slane %v2554_v47, %v3506_v37  ;;  %v2555_v34 = vld [vmem:[%s4414_s1 + $0x18] sm:$0xf] }
 0x2d9   :  { %2668 = vmatpush1.bf16.msra.mxu1 %v2667_v49  ;;  %v963_v49 = vmul.f32 %v946_v59, %v938_v46  ;;  %v966_v9 = vmul.f32 %v958_v21, %v932_v45  ;;  %v1001_v39 = vmul.f32 %v989_v35, %v3357_v30  ;;  %v997_v40 = vmul.f32 %v989_v35, %v3349_v26 }
 0x2da   :  { %v2671_v38 = vpack.c.bf16 %v969_v42, %v965_v33  ;;  %v930_v4 = vpop.permute.xlu1 %929  ;;  %v1007_v50 = vpop.permute.xlu0 %1006  ;;  %v2633_v63 = vpack.c.bf16 %v968_v31, %v964_v60  ;;  %v1033_v2 = vrot.slane %v2554_v47, %v3227_v22  ;;  %v1041_v44 = vrot.slane %v2554_v47, %v3230_v24 }
 0x2db   :  { %v933_v12 = vsel %vm931_vm5, %v3467_v13, %v930_v4  ;;  %v939_v10 = vsel %vm931_vm5, %v930_v4, %v3463_v11  ;;  %v1021_v48 = vsel %vm1018_vm6, %v1007_v50, %v3473_v16  ;;  %v2637_v11 = vpack.c.bf16 %v999_v61, %v995_v25 }
 0x2dc   :  { %v967_v41 = vmul.f32 %v946_v59, %v939_v10  ;;  %v970_v54 = vmul.f32 %v958_v21, %v933_v12  ;;  %2634 = vmatprep.subr.bf16.mxu0 %v2633_v63  ;;  %v1023_v59 = vsel %vm1018_vm6, %v3469_v14, %v1007_v50  ;;  %v1051_v21 = vmul.f32 %v1037_v51, %v1021_v48 }
 0x2dd   :  { %v1045_v33 = vrot.slane %v2554_v47, %v3514_v29  ;;  %v2673_v45 = vpack.c.bf16 %v1001_v39, %v997_v40  ;;  %v1089_v4 = vrot.slane %v2555_v34, %v3227_v22  ;;  %v1050_v63 = vmul.f32 %v1033_v2, %v1023_v59 }
 0x2de   :  { %v2635_v13 = vpack.c.bf16 %v967_v41, %v963_v49  ;;  %v1009_v8 = vpop.permute.xlu1 %1008  ;;  %v1015_v6 = vpop.permute.xlu0 %1014  ;;  %v2669_v7 = vpack.c.bf16 %v970_v54, %v966_v9  ;;  %v1093_v61 = vrot.slane %v2555_v34, %v3506_v37  ;;  %v4485_v25 = vpack.c.bf16 %v3259_v53, %v3256_v43 }
 0x2df   :  { %v1022_v17 = vsel %vm1018_vm6, %v1009_v8, %v3475_v18  ;;  %v1024_v1 = vsel %vm1018_vm6, %v3471_v15, %v1009_v8  ;;  %v1019_v31 = vsel %vm1018_vm6, %v3473_v16, %v1015_v6  ;;  %v1025_v42 = vsel %vm1018_vm6, %v1015_v6, %v3469_v14 }
 0x2e0   :  { %v1055_v60 = vmul.f32 %v1037_v51, %v1022_v17  ;;  %2636 = vmatpush1.bf16.msra.mxu0 %v2635_v13  ;;  %2670 = vmatprep.subr.bf16.mxu1 %v2669_v7  ;;  %v1054_v46 = vmul.f32 %v1033_v2, %v1024_v1  ;;  %v1053_v12 = vmul.f32 %v1045_v33, %v1025_v42 }
 0x2e1   :  { %2638 = vmatprep.subr.bf16.mxu0 %v2637_v11  ;;  %2672 = vmatpush1.bf16.msra.mxu1 %v2671_v38  ;;  %v1052_v38 = vmul.f32 %v1041_v44, %v1019_v31  ;;  %v4486_v41 = vpack.c.bf16 %v3269_v57, %v3266_v55  ;;  %v1097_v13 = vrot.slane %v2555_v34, %v3230_v24  ;;  %v2556_v57 = vld [vmem:[%s4414_s1 + $0x1c] sm:$0xf] }
 0x2e2   :  { %v1017_v35 = vpop.permute.xlu1 %1016  ;;  %v1063_v47 = vpop.permute.xlu0 %1062  ;;  %v2641_v50 = vpack.c.bf16 %v1055_v60, %v1051_v21  ;;  %2674 = vmatprep.subr.bf16.mxu1 %v2673_v45  ;;  %v1101_v8 = vrot.slane %v2555_v34, %v3514_v29  ;;  %v1145_v21 = vrot.slane %v2556_v57, %v3227_v22 }
 0x2e3   :  { %v1020_v16 = vsel %vm1018_vm6, %v3475_v18, %v1017_v35  ;;  %v1026_v14 = vsel %vm1018_vm6, %v1017_v35, %v3471_v15  ;;  %v1077_v49 = vsel %vm1074_vm7, %v1063_v47, %v3481_v28  ;;  %v1079_v18 = vsel %vm1074_vm7, %v3477_v19, %v1063_v47 }
 0x2e4   :  { %v1056_v10 = vmul.f32 %v1041_v44, %v1020_v16  ;;  %v1057_v51 = vmul.f32 %v1045_v33, %v1026_v14  ;;  %2640 = vmatpush1.bf16.msra.mxu0 %v4485_v25  ;;  %v2643_v15 = vpack.c.bf16 %v1054_v46, %v1050_v63  ;;  %v1106_v6 = vmul.f32 %v1089_v4, %v1079_v18 }
 0x2e5   :  { %2642 = vmatprep.subr.bf16.mxu0 %v2641_v50  ;;  %2676 = vmatpush1.bf16.msra.mxu1 %v4486_v41  ;;  %v1107_v7 = vmul.f32 %v1093_v61, %v1077_v49  ;;  %v1153_v63 = vrot.slane %v2556_v57, %v3230_v24  ;;  %v1157_v16 = vrot.slane %v2556_v57, %v3514_v29 }
 0x2e6   :  { %v2679_v9 = vpack.c.bf16 %v1056_v10, %v1052_v38  ;;  %v1065_v54 = vpop.permute.xlu1 %1064  ;;  %v1071_v48 = vpop.permute.xlu0 %1070  ;;  %v2677_v39 = vpack.c.bf16 %v1057_v51, %v1053_v12  ;;  %v2557_v10 = vld [vmem:[%s4414_s1 + $0x20] sm:$0xf] }
 0x2e7   :  { %v1078_v43 = vsel %vm1074_vm7, %v1065_v54, %v3483_v36  ;;  %v1080_v53 = vsel %vm1074_vm7, %v3479_v23, %v1065_v54  ;;  %v1075_v40 = vsel %vm1074_vm7, %v3481_v28, %v1071_v48  ;;  %v1081_v2 = vsel %vm1074_vm7, %v1071_v48, %v3477_v19 }
 0x2e8   :  { %v1110_v11 = vmul.f32 %v1089_v4, %v1080_v53  ;;  %v1111_v55 = vmul.f32 %v1093_v61, %v1078_v43  ;;  %2644 = vmatpush1.bf16.msra.mxu0 %v2643_v15  ;;  %2678 = vmatprep.subr.bf16.mxu1 %v2677_v39  ;;  %v1149_v19 = vrot.slane %v2556_v57, %v3506_v37 }
 0x2e9   :  { %2680 = vmatpush1.bf16.msra.mxu1 %v2679_v9  ;;  %v1108_v60 = vmul.f32 %v1097_v13, %v1075_v40  ;;  %v1109_v33 = vmul.f32 %v1101_v8, %v1081_v2  ;;  %v1205_v48 = vrot.slane %v2557_v10, %v3506_v37  ;;  %v1209_v40 = vrot.slane %v2557_v10, %v3230_v24 }
 0x2ea   :  { %v2647_v17 = vpack.c.bf16 %v1110_v11, %v1106_v6  ;;  %v1073_v1 = vpop.permute.xlu1 %1072  ;;  %v1119_v44 = vpop.permute.xlu0 %1118  ;;  %v2645_v34 = vpack.c.bf16 %v1111_v55, %v1107_v7  ;;  %v4487_v55 = vld [vmem:[#allocation20_spill] sm:$0xff]  ;;  %v1213_v2 = vrot.slane %v2557_v10, %v3514_v29 }
 0x2eb   :  { %v1076_v59 = vsel %vm1074_vm7, %v3483_v36, %v1073_v1  ;;  %v1082_v28 = vsel %vm1074_vm7, %v1073_v1, %v3479_v23  ;;  %v1133_v45 = vsel %vm1130_vm8, %v1119_v44, %v3489_v5  ;;  %v1135_v36 = vsel %vm1130_vm8, %v3485_v0, %v1119_v44 }
 0x2ec   :  { %v1112_v31 = vmul.f32 %v1097_v13, %v1076_v59  ;;  %v1113_v42 = vmul.f32 %v1101_v8, %v1082_v28  ;;  %2646 = vmatprep.subr.bf16.mxu0 %v2645_v34  ;;  %v1162_v14 = vmul.f32 %v1145_v21, %v1135_v36  ;;  %v1163_v61 = vmul.f32 %v1149_v19, %v1133_v45 }
 0x2ed   :  { %2648 = vmatpush1.bf16.msra.mxu0 %v2647_v17 }
 0x2ee   :  { %v2683_v46 = vpack.c.bf16 %v1112_v31, %v1108_v60  ;;  %v1121_v23 = vpop.permute.xlu1 %1120  ;;  %v1127_v35 = vpop.permute.xlu0 %1126  ;;  %v2681_v4 = vpack.c.bf16 %v1113_v42, %v1109_v33  ;;  %v3782_v42 = vpack.c.bf16 %v3351_v27, %v3343_v20  ;;  %v2697_v20 = vpack.c.bf16 %v3357_v30, %v3349_v26  ;;  %v4488_v27 = vld [vmem:[#allocation18_spill] sm:$0xff]  ;;  %v1411_v30 = vld [vmem:[%s4419_s11 + $0x8] sm:$0xff] }
 0x2ef   :  { %v1134_v47 = vsel %vm1130_vm8, %v1121_v23, %v3491_v52  ;;  %v1136_v50 = vsel %vm1130_vm8, %v3487_v56, %v1121_v23  ;;  %v1131_v51 = vsel %vm1130_vm8, %v3489_v5, %v1127_v35  ;;  %v1137_v25 = vsel %vm1130_vm8, %v1127_v35, %v3485_v0  ;;  %v1228_v35 = vld [vmem:[%s4415_s9 + $0x10] sm:$0xff]  ;;  %v1410_v26 = vld [vmem:[%s4419_s11] sm:$0xff] }
 0x2f0   :  { %v1166_v38 = vmul.f32 %v1145_v21, %v1136_v50  ;;  %v1167_v12 = vmul.f32 %v1149_v19, %v1134_v47  ;;  %2682 = vmatprep.subr.bf16.mxu1 %v2681_v4  ;;  %v1201_v5 = vrot.slane %v2557_v10, %v3227_v22  ;;  %v1164_v0 = vmul.f32 %v1153_v63, %v1131_v51  ;;  %v4489_v4 = vld [vmem:[#allocation19_spill] sm:$0xff] }
 0x2f1   :  { %2684 = vmatpush1.bf16.msra.mxu1 %v2683_v46  ;;  %v1165_v39 = vmul.f32 %v1157_v16, %v1137_v25  ;;  %v1226_v46 = vld [vmem:[%s4415_s9] sm:$0xff]  ;;  %v4490_v47 = vmov 0.0  }
 0x2f2   :  { %v2651_v49 = vpack.c.bf16 %v1166_v38, %v1162_v14  ;;  %v1129_v18 = vpop.permute.xlu1 %1128  ;;  %v1175_v15 = vpop.permute.xlu0 %1174  ;;  %v2649_v9 = vpack.c.bf16 %v1167_v12, %v1163_v61 }
 0x2f3   :  { %v1132_v41 = vsel %vm1130_vm8, %v3491_v52, %v1129_v18  ;;  %v1138_v54 = vsel %vm1130_vm8, %v1129_v18, %v3487_v56  ;;  %v1189_v13 = vsel %vm1186_vm9, %v1175_v15, %v3497_v3  ;;  %v1191_v52 = vsel %vm1186_vm9, %v3493_v58, %v1175_v15 }
 0x2f4   :  { %v1168_v43 = vmul.f32 %v1153_v63, %v1132_v41  ;;  %v1169_v53 = vmul.f32 %v1157_v16, %v1138_v54  ;;  %2650 = vmatprep.subr.bf16.mxu0 %v2649_v9  ;;  %v1218_v17 = vmul.f32 %v1201_v5, %v1191_v52  ;;  %v1219_v1 = vmul.f32 %v1205_v48, %v1189_v13 }
 0x2f5   :  { %2652 = vmatpush1.bf16.msra.mxu0 %v2651_v49 }
 0x2f6   :  { %v2687_v8 = vpack.c.bf16 %v1168_v43, %v1164_v0  ;;  %v1177_v56 = vpop.permute.xlu1 %1176  ;;  %v1183_v6 = vpop.permute.xlu0 %1182  ;;  %v2685_v7 = vpack.c.bf16 %v1169_v53, %v1165_v39 }
 0x2f7   :  { %v1190_v11 = vsel %vm1186_vm9, %v1177_v56, %v3508_v32  ;;  %v1192_v57 = vsel %vm1186_vm9, %v4487_v55, %v1177_v56  ;;  %v1187_v59 = vsel %vm1186_vm9, %v3497_v3, %v1183_v6  ;;  %v1193_v28 = vsel %vm1186_vm9, %v1183_v6, %v3493_v58 }
 0x2f8   :  { %v1222_v44 = vmul.f32 %v1201_v5, %v1192_v57  ;;  %v1223_v34 = vmul.f32 %v1205_v48, %v1190_v11  ;;  %2686 = vmatprep.subr.bf16.mxu1 %v2685_v7  ;;  %v1220_v3 = vmul.f32 %v1209_v40, %v1187_v59  ;;  %v1221_v45 = vmul.f32 %v1213_v2, %v1193_v28  ;;  %v1584_v57 = vld [vmem:[%s4420_s13] sm:$0xff] }
 0x2f9   :  { %2688 = vmatpush1.bf16.msra.mxu1 %v2687_v8 }
 0x2fa   :  { %v2655_v21 = vpack.c.bf16 %v1222_v44, %v1218_v17  ;;  %v1185_v19 = vpop.permute.xlu1 %1184  ;;  %v2653_v60 = vpack.c.bf16 %v1223_v34, %v1219_v1 }
 0x2fb   :  { %v1188_v33 = vsel %vm1186_vm9, %v3508_v32, %v1185_v19  ;;  %v1194_v31 = vsel %vm1186_vm9, %v1185_v19, %v4487_v55 }
 0x2fc   :  { %v1224_v36 = vmul.f32 %v1209_v40, %v1188_v33  ;;  %v1225_v58 = vmul.f32 %v1213_v2, %v1194_v31  ;;  %2654 = vmatprep.subr.bf16.mxu0 %v2653_v60 }
 0x2fd   :  { %2656 = vmatpush1.bf16.msra.mxu0 %v2655_v21 }
 0x2fe   :  { %v2691_v23 = vpack.c.bf16 %v1224_v36, %v1220_v3  ;;  %2694 = vmatprep.subr.bf16.mxu0 %v3782_v42  ;;  %v2689_v32 = vpack.c.bf16 %v1225_v58, %v1221_v45 }
 0x300   :  { %1313 = vmatmul.mubr.f32.vlgmr.msra.gmra.mrb[12].mxu0 %v1226_v46  ;;  %2690 = vmatprep.subr.bf16.mxu1 %v2689_v32 }
 0x301   :  { %2692 = vmatpush1.bf16.msra.mxu1 %v2691_v23  ;;  %2696 = vmatpush1.bf16.msra.mxu0 %v4488_v27 }
 0x302   :  { %2698 = vmatprep.subr.bf16.mxu1 %v2697_v20  ;;  %2559 = vmatprep.mubr.msk.f32.mxu0 %vm537_vm1, %v1229_v62 }
 0x304   :  { %1319 = vmatmul.mubr.f32.gmra.mrb[14].mxu0 %v1228_v35  ;;  %1390 = vmatmul.mubr.f32.vlgmr.msra.gmra.mrb[12].mxu1 %v1226_v46  ;;  %v1740_v46 = vld [vmem:[%s4421_s15] sm:$0xff] }
 0x305   :  { %2700 = vmatpush1.bf16.msra.mxu1 %v4489_v4  ;;  %2561 = vmatprep.mubr.msk.f32.mxu1 %vm537_vm1, %v1229_v62 }
 0x306   :  { %1494 = vmatprep.mubr.f32.mxu0 %v4490_v47 }
 0x307   :  { %v1235_v16 = vpop.permute.xlu0 %1234 }
 0x308   :  { %1396 = vmatmul.mubr.f32.gmra.mrb[14].mxu1 %v1228_v35  ;;  %2562 = vmatmul.mubr.msk.f32.vlgmr.msra.gmra.mrb[16].mxu0 %vm537_vm1, %v1410_v26  ;;  %v3900_v35 = vld [vmem:[%s4422_s2 + $0x4] sm:$0xf] }
 0x309   :  { %1571 = vmatprep.mubr.f32.mxu1 %v4490_v47  ;;  %1500 = vmatprep.mubr.f32.mxu0 %v4490_v47  ;;  %vm1995_vm12 = vcmp.gt.f32.partialorder %v3900_v35, 0.0 }
 0x30b   :  { %v1240_v14 = vpop.permute.xlu1 %1239  ;;  %v1589_v21 = vpop.permute.xlu0 %1588 }
 0x30c   :  { %2564 = vmatmul.mubr.msk.f32.vlgmr.msra.gmra.mrb[16].mxu1 %vm537_vm1, %v1410_v26  ;;  %2563 = vmatmul.mubr.msk.f32.gmra.mrb[18].mxu0 %vm537_vm1, %v1411_v30 }
 0x30d   :  { %1577 = vmatprep.mubr.f32.mxu1 %v4490_v47  ;;  %1658 = vmatprep.mubr.f32.mxu0 %v4490_v47 }
 0x310   :  { %2565 = vmatmul.mubr.msk.f32.gmra.mrb[18].mxu1 %vm537_vm1, %v1411_v30 }
 0x311   :  { %1729 = vmatprep.mubr.f32.mxu1 %v4490_v47 }
 0x3d3   :  { %v1314_v50 = vpop.f32.mrb[12].mxu0 }
 0x3d4   :  { %v1316_v63 = vpop.f32.mrb[13].mxu0  ;;  %v3816_v61 = vadd.f32 %v1314_v50, %v1235_v16 }
 0x3d5   :  { %v3818_v38 = vadd.f32 %v1316_v63, %v1235_v16 }
 0x3d6   :  { %v4454_v15 = vmax.f32 %v3816_v61, 0.0 }
 0x3d7   :  { %v1320_v12 = vpop.f32.mrb[14].mxu0  ;;  %v1391_v10 = vpop.f32.mrb[12].mxu1  ;;  %v4453_v54 = vmax.f32 %v3818_v38, 0.0 }
 0x3d8   :  { %v3820_v51 = vadd.f32 %v1320_v12, %v1240_v14  ;;  %v1322_v25 = vpop.f32.mrb[15].mxu0  ;;  %v1393_v49 = vpop.f32.mrb[13].mxu1  ;;  %v3826_v41 = vadd.f32 %v1391_v10, %v1235_v16 }
 0x3d9   :  { %v3822_v18 = vadd.f32 %v1322_v25, %v1240_v14  ;;  %v3830_v48 = vadd.f32 %v1393_v49, %v1235_v16  ;;  %v1747_v25 = vpop.permute.xlu1 %1746 }
 0x3da   :  { %v4452_v9 = vmax.f32 %v3820_v51, 0.0  ;;  %v4451_v8 = vmax.f32 %v3826_v41, 0.0 }
 0x3db   :  { %v4450_v5 = vmax.f32 %v3822_v18, 0.0  ;;  %v1397_v0 = vpop.f32.mrb[14].mxu1  ;;  %v4449_v6 = vmax.f32 %v3830_v48, 0.0  ;;  %v3866_v40 = vpop.f32.mrb[16].mxu0 }
 0x3dc   :  { %v2703_v39 = vpack.c.bf16 %v4452_v9, %v4454_v15  ;;  %v3836_v43 = vadd.f32 %v1397_v0, %v1240_v14  ;;  %v1399_v53 = vpop.f32.mrb[15].mxu1  ;;  %v3870_v17 = vpop.f32.mrb[17].mxu0 }
 0x3dd   :  { %v2701_v13 = vpack.c.bf16 %v4450_v5, %v4453_v54  ;;  %v3842_v52 = vadd.f32 %v1399_v53, %v1240_v14  ;;  %v1752_v0 = vpop.permute.xlu0 %1751 }
 0x3de   :  { %4491 = vst [vmem:[#allocation20_spill] sm:$0xff] %v3836_v43  ;;  %v4448_v56 = vmax.f32 %v3836_v43, 0.0 }
 0x3df   :  { %4492 = vst [vmem:[#allocation18_spill] sm:$0xff] %v3842_v52  ;;  %v4447_v7 = vmax.f32 %v3842_v52, 0.0  ;;  %2702 = vmatprep.subr.bf16.mxu0 %v2701_v13  ;;  %v3868_v2 = vpop.f32.mrb[16].mxu1  ;;  %v3874_v44 = vpop.f32.mrb[18].mxu0 }
 0x3e0   :  { %v2711_v11 = vpack.c.bf16 %v4448_v56, %v4451_v8  ;;  %2704 = vmatpush1.bf16.msra.mxu0 %v2703_v39  ;;  %v3872_v1 = vpop.f32.mrb[17].mxu1  ;;  %v3876_v34 = vpop.f32.mrb[19].mxu0 }
 0x3e1   :  { %v2709_v55 = vpack.c.bf16 %v4447_v7, %v4449_v6  ;;  %2706 = vmatprep.subr.bf16.mxu0 %v3782_v42  ;;  %v4511_v6 = vld [vmem:[#allocation14_spill] sm:$0xff] }
 0x3e3   :  { %2710 = vmatprep.subr.bf16.mxu1 %v2709_v55  ;;  %v3878_v59 = vpop.f32.mrb[18].mxu1 }
 0x3e4   :  { %2708 = vmatpush1.bf16.msra.mxu0 %v4488_v27  ;;  %2712 = vmatpush1.bf16.msra.mxu1 %v2711_v11  ;;  %v3880_v28 = vpop.f32.mrb[19].mxu1  ;;  %v3895_v27 = vld [vmem:[%s4422_s2] sm:$0xf] }
 0x3e5   :  { %2714 = vmatprep.subr.bf16.mxu1 %v2697_v20  ;;  %4493 = vst [vmem:[#allocation19_spill] sm:$0xff] %v3880_v28  ;;  %v1741_v20 = vld [vmem:[%s4421_s15 + $0x8] sm:$0xff]  ;;  %vm1916_vm11 = vcmp.gt.f32.partialorder %v3895_v27, 0.0 }
 0x3e7   :  { %2566 = vmatmul.mubr.msk.f32.vlgmr.msra.gmra.mrb[20].mxu0 %vm92_vm0, %v1584_v57 }
 0x3e8   :  { %2716 = vmatpush1.bf16.msra.mxu1 %v4489_v4  ;;  %1825 = vmatprep.mubr.f32.mxu0 %v4490_v47  ;;  %v4494_v4 = vmov 0  }
 0x3e9   :  { %v1917_v26 = vsel %vm1916_vm11, 1, %v4494_v4  ;;  %v1996_v30 = vsel %vm1995_vm12, 1, %v4494_v4 }
 0x3ea   :  { %v1921_v63 = vrot.slane %v1917_v26, %v3227_v22  ;;  %v1929_v16 = vrot.slane %v1917_v26, %v3230_v24  ;;  %v1925_v12 = vrot.slane %v1917_v26, %v3506_v37  ;;  %v1933_v10 = vrot.slane %v1917_v26, %v3514_v29 }
 0x3eb   :  { %2567 = vmatmul.mubr.msk.f32.vlgmr.msra.gmra.mrb[20].mxu1 %vm92_vm0, %v1584_v57  ;;  %v2000_v49 = vrot.slane %v1996_v30, %v3227_v22  ;;  %v2004_v53 = vrot.slane %v1996_v30, %v3506_v37  ;;  %v2008_v13 = vrot.slane %v1996_v30, %v3230_v24 }
 0x3ec   :  { %1902 = vmatprep.mubr.f32.mxu1 %v4490_v47  ;;  %vm3917_vm13 = vcmp.eq.s32.totalorder %v1921_v63, 1  ;;  %vm3921_vm14 = vcmp.eq.s32.totalorder %v1929_v16, 1  ;;  %vm3930_vm15 = vcmp.eq.s32.totalorder %v1925_v12, 1  ;;  %vm3934_vm1 = vcmp.eq.s32.totalorder %v1933_v10, 1 }
 0x3ed   :  { %vm3942_vm2 = vcmp.eq.s32.totalorder %v2000_v49, 1  ;;  %vm3952_vm3 = vcmp.eq.s32.totalorder %v2004_v53, 1  ;;  %vm3956_vm4 = vcmp.eq.s32.totalorder %v2008_v13, 1 }
 0x4ba   :  { %v1660_v19 = vpop.f32.mrb[20].mxu0 }
 0x4bb   :  { %v1661_v60 = vadd.f32 %v1660_v19, %v1589_v21  ;;  %v1662_v33 = vpop.f32.mrb[21].mxu0 }
 0x4bc   :  { %v1663_v31 = vadd.f32 %v1662_v33, %v1589_v21 }
 0x4bd   :  { %v1736_v45 = vmax.f32 %v1661_v60, 0.0  ;;  %v2012_v60 = vrot.slane %v1996_v30, %v3514_v29 }
 0x4be   :  { %v1737_v42 = vmax.f32 %v1663_v31, 0.0  ;;  %v1731_v3 = vpop.f32.mrb[20].mxu1 }
 0x4bf   :  { %v1732_v36 = vadd.f32 %v1731_v3, %v1589_v21  ;;  %v1733_v58 = vpop.f32.mrb[21].mxu1  ;;  %vm3966_vm5 = vcmp.eq.s32.totalorder %v2012_v60, 1 }
 0x4c0   :  { %v1734_v23 = vadd.f32 %v1733_v58, %v1589_v21  ;;  %1761 = vmatprep.subr.mxu0 %v1737_v42 }
 0x4c1   :  { %1762 = vmatpush1.msra.mxu0 %v1736_v45  ;;  %v1738_v62 = vmax.f32 %v1732_v36, 0.0 }
 0x4c2   :  { %v1739_v32 = vmax.f32 %v1734_v23, 0.0  ;;  %2568 = vmatmul.mubr.msk.f32.vlgmr.msra.gmra.mrb[22].mxu0 %vm1754_vm10, %v1740_v46  ;;  %v303_v23 = vld [vmem:[%s4423_s6] sm:$0xff] }
 0x4c3   :  { %1831 = vmatprep.mubr.f32.mxu0 %v4490_v47 }
 0x4c4   :  { %1838 = vmatprep.subr.mxu1 %v1739_v32 }
 0x4c5   :  { %1839 = vmatpush1.msra.mxu1 %v1738_v62 }
 0x4c6   :  { %2569 = vmatmul.mubr.msk.f32.gmra.mrb[24].mxu0 %vm1754_vm10, %v1741_v20  ;;  %2570 = vmatmul.mubr.msk.f32.vlgmr.msra.gmra.mrb[22].mxu1 %vm1754_vm10, %v1740_v46 }
 0x4c7   :  { %1908 = vmatprep.mubr.f32.mxu1 %v4490_v47  ;;  %2308 = vmatprep.mubr.f32.mxu0 %v4490_v47 }
 0x4ca   :  { %2571 = vmatmul.mubr.msk.f32.gmra.mrb[24].mxu1 %vm1754_vm10, %v1741_v20 }
 0x4cb   :  { %2397 = vmatprep.mubr.f32.mxu1 %v4490_v47 }
 0x595   :  { %v1827_v50 = vpop.f32.mrb[22].mxu0 }
 0x596   :  { %v1829_v14 = vpop.f32.mrb[23].mxu0  ;;  %v3911_v39 = vadd.f32 %v1827_v50, %v1747_v25 }
 0x597   :  { %v3915_v11 = vadd.f32 %v1829_v14, %v1747_v25 }
 0x598   :  { %v1938_v32 = vsel %vm3917_vm13, %v3911_v39, -1e+30  ;;  %v2017_v4 = vsel %vm3942_vm2, %v3911_v39, -1e+30 }
 0x599   :  { %v1833_v55 = vpop.f32.mrb[24].mxu0  ;;  %v1904_v57 = vpop.f32.mrb[22].mxu1  ;;  %v1939_v30 = vsel %vm3930_vm15, %v3915_v11, -1e+30 }
 0x59a   :  { %v3926_v33 = vadd.f32 %v1833_v55, %v1752_v0  ;;  %v3928_v31 = vadd.f32 %v1904_v57, %v1747_v25  ;;  %v1835_v42 = vpop.f32.mrb[25].mxu0  ;;  %v1906_v3 = vpop.f32.mrb[23].mxu1 }
 0x59b   :  { %v3938_v58 = vadd.f32 %v1835_v42, %v1752_v0  ;;  %v3940_v46 = vadd.f32 %v1906_v3, %v1747_v25 }
 0x59c   :  { %v1940_v62 = vsel %vm3921_vm14, %v3928_v31, -1e+30  ;;  %v1942_v25 = vsel %vm3917_vm13, %v3926_v33, -1e+30  ;;  %v2021_v49 = vsel %vm3942_vm2, %v3926_v33, -1e+30 }
 0x59d   :  { %v1910_v26 = vpop.f32.mrb[24].mxu1  ;;  %v1941_v50 = vsel %vm3934_vm1, %v3940_v46, -1e+30  ;;  %v1946_v63 = vmax.f32 %v1938_v32, %v1940_v62  ;;  %v1943_v13 = vsel %vm3930_vm15, %v3938_v58, -1e+30 }
 0x59e   :  { %v3970_v14 = vadd.f32 %v1910_v26, %v1752_v0  ;;  %v1912_v12 = vpop.f32.mrb[25].mxu1  ;;  %v1947_v10 = vmax.f32 %v1939_v30, %v1941_v50  ;;  %v2022_v55 = vsel %vm3952_vm3, %v3938_v58, -1e+30  ;;  %v2019_v57 = vsel %vm3956_vm4, %v3928_v31, -1e+30 }
 0x59f   :  { %v3978_v53 = vadd.f32 %v1912_v12, %v1752_v0  ;;  %v2020_v42 = vsel %vm3966_vm5, %v3940_v46, -1e+30  ;;  %v2018_v30 = vsel %vm3952_vm3, %v3915_v11, -1e+30 }
 0x5a0   :  { %v1948_v21 = vmax.f32 %v1946_v63, %v1947_v10  ;;  %v1944_v60 = vsel %vm3921_vm14, %v3970_v14, -1e+30  ;;  %v2023_v0 = vsel %vm3956_vm4, %v3970_v14, -1e+30  ;;  %v2025_v63 = vmax.f32 %v2017_v4, %v2019_v57  ;;  %v304_v10 = vld [vmem:[%s4423_s6 + $0x8] sm:$0xff] }
 0x5a1   :  { %v1945_v3 = vsel %vm3934_vm1, %v3978_v53, -1e+30  ;;  %v1951_v45 = vmax.f32 %v1942_v25, %v1944_v60  ;;  %v2024_v32 = vsel %vm3966_vm5, %v3978_v53, -1e+30  ;;  %v2030_v62 = vmax.f32 %v2021_v49, %v2023_v0 }
 0x5a2   :  { %1949 = vmax.xlane.f32.xlu1 %v1948_v21  ;;  %v1952_v19 = vmax.f32 %v1943_v13, %v1945_v3  ;;  %v2031_v26 = vmax.f32 %v2022_v55, %v2024_v32  ;;  %v2026_v12 = vmax.f32 %v2018_v30, %v2020_v42  ;;  %v4018_v25 = vrot.slane %v3900_v35, %v3227_v22 }
 0x5a3   :  { %v4022_v49 = vrot.slane %v3900_v35, %v3506_v37  ;;  %v4026_v13 = vrot.slane %v3900_v35, %v3230_v24  ;;  %v4030_v55 = vrot.slane %v3900_v35, %v3514_v29  ;;  %v4034_v57 = vrot.slane %v3895_v27, %v3227_v22 }
 0x5a4   :  { %v1953_v50 = vmax.f32 %v1951_v45, %v1952_v19  ;;  %v2032_v36 = vmax.f32 %v2030_v62, %v2031_v26  ;;  %v2027_v16 = vmax.f32 %v2025_v63, %v2026_v12  ;;  %v4038_v21 = vrot.slane %v3895_v27, %v3506_v37 }
 0x5a5   :  { %v4042_v60 = vrot.slane %v3895_v27, %v3230_v24  ;;  %v4046_v0 = vrot.slane %v3895_v27, %v3514_v29 }
 0x5a6   :  { %1954 = vmax.xlane.f32.xlu0 %v1953_v50  ;;  %2033 = vmax.xlane.f32.xlu1 %v2032_v36 }
 0x5aa   :  { %2028 = vmax.xlane.f32.xlu0 %v2027_v16 }
 0x5b7   :  { %312 = vperm.xlu1 %2744, %v304_v10  }
 0x5c0   :  { %307 = vperm.xlu0 %2743, %v303_v23  }
 0x62f   :  { %v1950_v20 = vpop.xlane.xlu1 %1949 }
 0x630   :  { %v1977_v29 = vmul.f32 %v4034_v57, %v1950_v20  ;;  %v1978_v27 = vmul.f32 %v4038_v21, %v1950_v20  ;;  %v1979_v26 = vmul.f32 %v4042_v60, %v1950_v20  ;;  %v1980_v4 = vmul.f32 %v4046_v0, %v1950_v20 }
 0x633   :  { %v1955_v42 = vpop.xlane.xlu0 %1954  ;;  %v2034_v3 = vpop.xlane.xlu1 %2033 }
 0x634   :  { %v1981_v35 = vmul.f32 %v4034_v57, %v1955_v42  ;;  %v1982_v45 = vmul.f32 %v4038_v21, %v1955_v42  ;;  %v1983_v22 = vmul.f32 %v4042_v60, %v1955_v42  ;;  %v1984_v32 = vmul.f32 %v4046_v0, %v1955_v42 }
 0x635   :  { %v2060_v37 = vmul.f32 %v4018_v25, %v2034_v3  ;;  %v2061_v62 = vmul.f32 %v4022_v49, %v2034_v3  ;;  %v2062_v24 = vmul.f32 %v4026_v13, %v2034_v3  ;;  %v2063_v19 = vmul.f32 %v4030_v55, %v2034_v3 }
 0x637   :  { %v2068_v30 = vadd.f32 %v2060_v37, %v1981_v35  ;;  %v2069_v50 = vadd.f32 %v2061_v62, %v1982_v45  ;;  %v2070_v36 = vadd.f32 %v2062_v24, %v1983_v22  ;;  %v2071_v63 = vadd.f32 %v2063_v19, %v1984_v32  ;;  %v2029_v12 = vpop.xlane.xlu0 %2028  ;;  %v313_v3 = vpop.permute.xlu1 %312 }
 0x638   :  { %v2056_v16 = vmul.f32 %v4018_v25, %v2029_v12  ;;  %v2057_v10 = vmul.f32 %v4022_v49, %v2029_v12  ;;  %v2058_v23 = vmul.f32 %v4026_v13, %v2029_v12  ;;  %v2059_v42 = vmul.f32 %v4030_v55, %v2029_v12 }
 0x639   :  { %v2076_v7 = vsub.f32 %v3926_v33, %v2068_v30  ;;  %v2077_v56 = vsub.f32 %v3938_v58, %v2069_v50  ;;  %v2078_v20 = vsub.f32 %v3970_v14, %v2070_v36  ;;  %v2079_v35 = vsub.f32 %v3978_v53, %v2071_v63  ;;  %v4512_v53 = vld [vmem:[#allocation16_spill] sm:$0xff]  ;;  %v4515_v36 = vld [vmem:[#allocation10_spill] sm:$0xff] }
 0x63a   :  { %v2064_v45 = vadd.f32 %v2056_v16, %v1977_v29  ;;  %v2065_v22 = vadd.f32 %v2057_v10, %v1978_v27  ;;  %v2066_v32 = vadd.f32 %v2058_v23, %v1979_v26  ;;  %v2067_v37 = vadd.f32 %v2059_v42, %v1980_v4  ;;  %v4513_v27 = vld [vmem:[#allocation15_spill] sm:$0xff]  ;;  %v4516_v10 = vld [vmem:[#allocation12_spill] sm:$0xff] }
 0x63b   :  { %v2088_v62 = vmul.f32 1.442695, %v2076_v7  ;;  %v2090_v24 = vmul.f32 1.442695, %v2077_v56  ;;  %v2092_v19 = vmul.f32 1.442695, %v2078_v20  ;;  %v4069_v5 = vadd.f32 %v4511_v6, %v313_v3 }
 0x63c   :  { %v2094_v12 = vmul.f32 1.442695, %v2079_v35  ;;  %v2072_v8 = vsub.f32 %v3911_v39, %v2064_v45  ;;  %v2073_v33 = vsub.f32 %v3915_v11, %v2065_v22  ;;  %v2074_v58 = vsub.f32 %v3928_v31, %v2066_v32  ;;  %v4514_v39 = vld [vmem:[#allocation17_spill] sm:$0xff] }
 0x63d   :  { %2809 = vpow2.f32 %v2088_v62  ;;  %v2075_v14 = vsub.f32 %v3940_v46, %v2067_v37  ;;  %v4076_v29 = vadd.f32 %v4512_v53, %v313_v3  ;;  %v4079_v7 = vadd.f32 %v4513_v27, %v313_v3  ;;  %v4518_v45 = vld [vmem:[#allocation13_spill] sm:$0xff] }
 0x63e   :  { %2811 = vpow2.f32 %v2090_v24  ;;  %v2080_v56 = vmul.f32 1.442695, %v2072_v8  ;;  %v2082_v6 = vmul.f32 1.442695, %v2073_v33  ;;  %v2084_v26 = vmul.f32 1.442695, %v2074_v58 }
 0x63f   :  { %2813 = vpow2.f32 %v2092_v19  ;;  %v2086_v4 = vmul.f32 1.442695, %v2075_v14  ;;  %v4082_v30 = vadd.f32 %v4514_v39, %v313_v3  ;;  %v479_v11 = vsub.f32 0.0, %v4069_v5  ;;  %v308_v31 = vpop.permute.xlu0 %307  ;;  %v4517_v3 = vld [vmem:[#allocation11_spill] sm:$0xff] }
 0x640   :  { %2815 = vpow2.f32 %v2094_v12  ;;  %v480_v46 = vsub.f32 0.0, %v4076_v29  ;;  %v481_v50 = vsub.f32 0.0, %v4079_v7  ;;  %v4088_v63 = vadd.f32 %v4515_v36, %v308_v31 }
 0x641   :  { %2817 = vpow2.f32 %v2080_v56  ;;  %v482_v8 = vsub.f32 0.0, %v4082_v30  ;;  %v491_v16 = vmul.f32 1.442695, %v479_v11  ;;  %v4092_v23 = vadd.f32 %v4516_v10, %v308_v31 }
 0x642   :  { %2819 = vpow2.f32 %v2082_v6  ;;  %v493_v42 = vmul.f32 1.442695, %v480_v46  ;;  %v4095_v20 = vadd.f32 %v4517_v3, %v308_v31  ;;  %v495_v35 = vmul.f32 1.442695, %v481_v50 }
 0x643   :  { %2821 = vpow2.f32 %v2084_v26  ;;  %v4098_v22 = vadd.f32 %v4518_v45, %v308_v31  ;;  %v475_v32 = vsub.f32 0.0, %v4088_v63  ;;  %v497_v37 = vmul.f32 1.442695, %v482_v8 }
 0x644   :  { %2823 = vpow2.f32 %v2086_v4  ;;  %v476_v62 = vsub.f32 0.0, %v4092_v23  ;;  %v477_v24 = vsub.f32 0.0, %v4095_v20 }
 0x645   :  { %2825 = vpow2.f32 %v491_v16  ;;  %v478_v19 = vsub.f32 0.0, %v4098_v22  ;;  %v483_v12 = vmul.f32 1.442695, %v475_v32 }
 0x646   :  { %2827 = vpow2.f32 %v493_v42  ;;  %v485_v33 = vmul.f32 1.442695, %v476_v62  ;;  %v487_v14 = vmul.f32 1.442695, %v477_v24 }
 0x647   :  { %v4104_v58 = vpop.eup %2809  ;;  %2829 = vpow2.f32 %v495_v35  ;;  %v489_v27 = vmul.f32 1.442695, %v478_v19 }
 0x648   :  { %v4106_v53 = vpop.eup %2811  ;;  %2831 = vpow2.f32 %v497_v37  ;;  %v2134_v6 = vmul.f32 %v4104_v58, %v4018_v25  ;;  %v2100_v39 = vmul.f32 %v4104_v58, %v4034_v57 }
 0x649   :  { %v4108_v56 = vpop.eup %2813  ;;  %2833 = vpow2.f32 %v483_v12  ;;  %v2135_v4 = vmul.f32 %v4106_v53, %v4022_v49  ;;  %v2101_v11 = vmul.f32 %v4106_v53, %v4038_v21 }
 0x64a   :  { %v4112_v26 = vpop.eup %2815  ;;  %2835 = vpow2.f32 %v485_v33 }
 0x64b   :  { %v4120_v31 = vpop.eup %2817  ;;  %2837 = vpow2.f32 %v487_v14  ;;  %v2143_v3 = vadd.f32 %v2135_v4, %v2134_v6  ;;  %v2109_v35 = vadd.f32 %v2101_v11, %v2100_v39  ;;  %v2136_v14 = vmul.f32 %v4108_v56, %v4026_v13 }
 0x64c   :  { %v4122_v46 = vpop.eup %2819  ;;  %2839 = vpow2.f32 %v489_v27  ;;  %v2130_v50 = vmul.f32 %v4120_v31, %v4018_v25  ;;  %v2096_v36 = vmul.f32 %v4120_v31, %v4034_v57  ;;  %v2102_v27 = vmul.f32 %v4108_v56, %v4042_v60 }
 0x64d   :  { %v4128_v8 = vpop.eup %2821  ;;  %v2131_v16 = vmul.f32 %v4122_v46, %v4022_v49  ;;  %v2097_v10 = vmul.f32 %v4122_v46, %v4038_v21 }
 0x64e   :  { %v4134_v42 = vpop.eup %2823  ;;  %v2132_v32 = vmul.f32 %v4128_v8, %v4026_v13  ;;  %v2098_v62 = vmul.f32 %v4128_v8, %v4042_v60 }
 0x64f   :  { %v2826_v45 = vpop.eup %2825  ;;  %v2138_v37 = vadd.f32 %v2131_v16, %v2130_v50  ;;  %v2104_v24 = vadd.f32 %v2097_v10, %v2096_v36  ;;  %v2133_v33 = vmul.f32 %v4134_v42, %v4030_v55  ;;  %v2099_v11 = vmul.f32 %v4134_v42, %v4046_v0 }
 0x650   :  { %v2828_v19 = vpop.eup %2827  ;;  %v503_v12 = vadd.f32 1.0, %v2826_v45  ;;  %v2144_v10 = vadd.f32 %v2143_v3, %v2136_v14  ;;  %v2110_v45 = vadd.f32 %v2109_v35, %v2102_v27  ;;  %v2103_v3 = vmul.f32 %v4112_v26, %v4046_v0 }
 0x651   :  { %v2830_v6 = vpop.eup %2829  ;;  %v504_v4 = vadd.f32 1.0, %v2828_v19  ;;  %v2139_v39 = vadd.f32 %v2138_v37, %v2132_v32  ;;  %v2105_v50 = vadd.f32 %v2104_v24, %v2098_v62  ;;  %v2137_v37 = vmul.f32 %v4112_v26, %v4030_v55 }
 0x652   :  { %v2832_v16 = vpop.eup %2831  ;;  %v505_v36 = vadd.f32 1.0, %v2830_v6  ;;  %2841 = vrcp.f32 %v503_v12  ;;  %v2111_v12 = vadd.f32 %v2110_v45, %v2103_v3 }
 0x653   :  { %v2834_v9 = vpop.eup %2833  ;;  %v506_v54 = vadd.f32 1.0, %v2832_v16  ;;  %2843 = vrcp.f32 %v504_v4  ;;  %v2140_v15 = vadd.f32 %v2139_v39, %v2133_v33  ;;  %v2106_v47 = vadd.f32 %v2105_v50, %v2099_v11  ;;  %v2208_v16 = vld [vmem:[%s4425_s18] sm:$0xff] }
 0x654   :  { %v2836_v52 = vpop.eup %2835  ;;  %2845 = vrcp.f32 %v505_v36  ;;  %v499_v43 = vadd.f32 1.0, %v2834_v9  ;;  %v2145_v19 = vadd.f32 %v2144_v10, %v2137_v37  ;;  %v2209_v36 = vld [vmem:[%s4425_s18 + $0x8] sm:$0xff]  ;;  %v2211_v10 = vld [vmem:[%s4425_s18 + $0x18] sm:$0xff] }
 0x655   :  { %v2838_v28 = vpop.eup %2837  ;;  %2847 = vrcp.f32 %v506_v54  ;;  %v500_v32 = vadd.f32 1.0, %v2836_v52  ;;  %2141 = vadd.xlane.f32.xlu0 %v2140_v15  ;;  %2107 = vadd.xlane.f32.xlu1 %v2106_v47 }
 0x656   :  { %v2840_v35 = vpop.eup %2839  ;;  %v501_v62 = vadd.f32 1.0, %v2838_v28  ;;  %2849 = vrcp.f32 %v499_v43 }
 0x657   :  { %v502_v24 = vadd.f32 1.0, %v2840_v35  ;;  %2851 = vrcp.f32 %v500_v32 }
 0x658   :  { %2853 = vrcp.f32 %v501_v62 }
 0x659   :  { %2855 = vrcp.f32 %v502_v24  ;;  %2146 = vadd.xlane.f32.xlu1 %v2145_v19  ;;  %2112 = vadd.xlane.f32.xlu0 %v2111_v12 }
 0x65c   :  { %v2842_v9 = vpop.eup %2841 }
 0x65d   :  { %v2844_v15 = vpop.eup %2843  ;;  %v4153_v14 = vmul.f32 %v2842_v9, %v4069_v5 }
 0x65e   :  { %v2846_v47 = vpop.eup %2845  ;;  %v4162_v6 = vmul.f32 %v2844_v15, %v4076_v29 }
 0x65f   :  { %v2848_v54 = vpop.eup %2847  ;;  %v4165_v39 = vmul.f32 %v2846_v47, %v4079_v7 }
 0x660   :  { %v2850_v52 = vpop.eup %2849 }
 0x661   :  { %v2852_v33 = vpop.eup %2851  ;;  %v4156_v28 = vmul.f32 %v2850_v52, %v4088_v63 }
 0x662   :  { %v2854_v43 = vpop.eup %2853  ;;  %v4159_v27 = vmul.f32 %v2852_v33, %v4092_v23  ;;  %v4178_v23 = vmul.f32 %v2848_v54, %v4082_v30  ;;  %v1412_v30 = vld [vmem:[%s4424_s12] sm:$0xff] }
 0x663   :  { %v2856_v4 = vpop.eup %2855  ;;  %v4168_v11 = vmul.f32 %v2854_v43, %v4095_v20  ;;  %v2723_v5 = vpack.c.bf16 %v4153_v14, %v4156_v28  ;;  %v1413_v20 = vld [vmem:[%s4424_s12 + $0x8] sm:$0xff]  ;;  %v2206_v14 = vld [vmem:[%s4426_s17 + $0x10] sm:$0xff]  ;;  %v2207_v28 = vld [vmem:[%s4426_s17 + $0x18] sm:$0xff] }
 0x664   :  { %v2721_v63 = vpack.c.bf16 %v4162_v6, %v4159_v27  ;;  %v4175_v50 = vmul.f32 %v2856_v4, %v4098_v22  ;;  %v2210_v22 = vld [vmem:[%s4425_s18 + $0x10] sm:$0xff]  ;;  %v4538_v27 = vmov 0.0   ;;  %v2205_v6 = vld [vmem:[%s4426_s17 + $0x8] sm:$0xff] }
 0x665   :  { %v2731_v29 = vpack.c.bf16 %v4165_v39, %v4168_v11 }
 0x666   :  { %v2729_v7 = vpack.c.bf16 %v4178_v23, %v4175_v50 }
 0x66a   :  { %1421 = vperm.xlu1 %2744, %v1413_v20  }
 0x66e   :  { %2214 = vperm.xlu1 %2744, %v2208_v16  }
 0x66f   :  { %1416 = vperm.xlu0 %2743, %v1412_v30  }
 0x672   :  { %2224 = vperm.xlu1 %2744, %v2210_v22  }
 0x673   :  { %2219 = vperm.xlu0 %2743, %v2209_v36  }
 0x677   :  { %2229 = vperm.xlu0 %2743, %v2211_v10  }
 0x6e2   :  { %v2142_v45 = vpop.xlane.xlu0 %2141  ;;  %v2108_v32 = vpop.xlane.xlu1 %2107 }
 0x6e3   :  { %v2148_v37 = vmul.f32 %v2142_v45, %v4018_v25  ;;  %v2149_v3 = vmul.f32 %v2142_v45, %v4022_v49  ;;  %v2150_v35 = vmul.f32 %v2142_v45, %v4026_v13  ;;  %v2151_v62 = vmul.f32 %v2142_v45, %v4030_v55 }
 0x6e4   :  { %v2114_v24 = vmul.f32 %v2108_v32, %v4034_v57  ;;  %v2115_v19 = vmul.f32 %v2108_v32, %v4038_v21  ;;  %v2116_v12 = vmul.f32 %v2108_v32, %v4042_v60  ;;  %v2117_v9 = vmul.f32 %v2108_v32, %v4046_v0 }
 0x6e6   :  { %v2156_v15 = vadd.f32 %v2148_v37, %v2114_v24  ;;  %v2157_v47 = vadd.f32 %v2149_v3, %v2115_v19  ;;  %v2158_v54 = vadd.f32 %v2150_v35, %v2116_v12  ;;  %v2159_v52 = vadd.f32 %v2151_v62, %v2117_v9  ;;  %v2113_v33 = vpop.xlane.xlu0 %2112  ;;  %v2147_v43 = vpop.xlane.xlu1 %2146  ;;  %v4519_v3 = vld [vmem:[#allocation6_spill] sm:$0xff]  ;;  %v4521_v35 = vld [vmem:[#allocation3_spill] sm:$0xff] }
 0x6e7   :  { %v2118_v4 = vmul.f32 %v2113_v33, %v4034_v57  ;;  %v2119_v20 = vmul.f32 %v2113_v33, %v4038_v21  ;;  %v2120_v16 = vmul.f32 %v2113_v33, %v4042_v60  ;;  %v2121_v30 = vmul.f32 %v2113_v33, %v4046_v0  ;;  %v4523_v9 = vld [vmem:[#allocation2_spill] sm:$0xff] }
 0x6e8   :  { %2857 = vrcp.f32 %v2156_v15  ;;  %v2152_v22 = vmul.f32 %v2147_v43, %v4018_v25  ;;  %v2153_v36 = vmul.f32 %v2147_v43, %v4022_v49  ;;  %v2154_v10 = vmul.f32 %v2147_v43, %v4026_v13 }
 0x6e9   :  { %2859 = vrcp.f32 %v2157_v47  ;;  %v2155_v45 = vmul.f32 %v2147_v43, %v4030_v55  ;;  %v4520_v49 = vmax.f32 %v3816_v61, 0.0  ;;  %v4522_v55 = vmax.f32 %v3818_v38, 0.0 }
 0x6ea   :  { %2861 = vrcp.f32 %v2158_v54  ;;  %v2160_v32 = vadd.f32 %v2152_v22, %v2118_v4  ;;  %v2161_v37 = vadd.f32 %v2153_v36, %v2119_v20  ;;  %v2162_v57 = vadd.f32 %v2154_v10, %v2120_v16  ;;  %v4525_v54 = vld [vmem:[#allocation9_spill] sm:$0xff]  ;;  %v1422_v43 = vpop.permute.xlu1 %1421  ;;  %v4529_v36 = vld [vmem:[#allocation7_spill] sm:$0xff] }
 0x6eb   :  { %2863 = vrcp.f32 %v2159_v52  ;;  %v2163_v21 = vadd.f32 %v2155_v45, %v2121_v30  ;;  %v2180_v13 = vadd.f32 %v4520_v49, %v4519_v3  ;;  %v2181_v62 = vadd.f32 %v4522_v55, %v4521_v35  ;;  %v4527_v20 = vld [vmem:[#allocation5_spill] sm:$0xff]  ;;  %v4531_v35 = vld [vmem:[#allocation19_spill] sm:$0xff] }
 0x6ec   :  { %2865 = vrcp.f32 %v2160_v32  ;;  %v4524_v15 = vmax.f32 %v3820_v51, 0.0  ;;  %v4526_v52 = vmax.f32 %v3826_v41, 0.0  ;;  %v4530_v41 = vmax.f32 %v3830_v48, 0.0 }
 0x6ed   :  { %2867 = vrcp.f32 %v2161_v37 }
 0x6ee   :  { %2869 = vrcp.f32 %v2162_v57  ;;  %v1417_v60 = vpop.permute.xlu0 %1416  ;;  %v2184_v47 = vadd.f32 %v4524_v15, %v4523_v9  ;;  %v2182_v33 = vadd.f32 %v4526_v52, %v4525_v54  ;;  %v2183_v10 = vadd.f32 %v4530_v41, %v4529_v36  ;;  %v4536_v15 = vld [vmem:[#allocation18_spill] sm:$0xff]  ;;  %v2215_v39 = vpop.permute.xlu1 %2214 }
 0x6ef   :  { %2871 = vrcp.f32 %v2163_v21  ;;  %v1497_v24 = vadd.f32 %v3866_v40, %v1417_v60  ;;  %v1499_v61 = vadd.f32 %v3870_v17, %v1417_v60  ;;  %v4528_v40 = vmax.f32 %v3822_v18, 0.0 }
 0x6f0   :  { %v1576_v45 = vadd.f32 %v3872_v1, %v1417_v60  ;;  %v1503_v18 = vadd.f32 %v3874_v44, %v1422_v43  ;;  %v1582_v44 = vadd.f32 %v4531_v35, %v1422_v43  ;;  %v4537_v54 = vmax.f32 %v4536_v15, 0.0 }
 0x6f1   :  { %v2185_v16 = vadd.f32 %v4528_v40, %v4527_v20 }
 0x6f2   :  { %v2858_v0 = vpop.eup %2857  ;;  %v2220_v40 = vpop.permute.xlu0 %2219 }
 0x6f3   :  { %v2860_v25 = vpop.eup %2859  ;;  %v2172_v19 = vmul.f32 %v2858_v0, %v4120_v31  ;;  %v1574_v31 = vadd.f32 %v3868_v2, %v1417_v60  ;;  %v1505_v0 = vadd.f32 %v3876_v34, %v1422_v43 }
 0x6f4   :  { %v2862_v12 = vpop.eup %2861  ;;  %v2173_v4 = vmul.f32 %v2860_v25, %v4122_v46 }
 0x6f5   :  { %v2864_v38 = vpop.eup %2863  ;;  %v2174_v30 = vmul.f32 %v2862_v12, %v4128_v8  ;;  %v2188_v51 = vmul.f32 %v2172_v19, %v1497_v24  ;;  %v4532_v24 = vld [vmem:[#allocation4_spill] sm:$0xff] }
 0x6f6   :  { %v2866_v22 = vpop.eup %2865  ;;  %v2175_v17 = vmul.f32 %v2864_v38, %v4134_v42  ;;  %v2189_v46 = vmul.f32 %v2173_v4, %v1499_v61  ;;  %v1580_v42 = vadd.f32 %v3878_v59, %v1422_v43  ;;  %v4533_v19 = vld [vmem:[#allocation20_spill] sm:$0xff] }
 0x6f7   :  { %v2868_v32 = vpop.eup %2867  ;;  %v2176_v37 = vmul.f32 %v2866_v22, %v4104_v58  ;;  %v2190_v57 = vmul.f32 %v2174_v30, %v1574_v31  ;;  %v2196_v2 = vadd.f32 %v2188_v51, %v2180_v13 }
 0x6f8   :  { %v2870_v21 = vpop.eup %2869  ;;  %v2177_v8 = vmul.f32 %v2868_v32, %v4106_v53  ;;  %v2191_v25 = vmul.f32 %v2175_v17, %v1576_v45  ;;  %v2197_v48 = vadd.f32 %v2189_v46, %v2181_v62  ;;  %v4534_v53 = vmax.f32 %v4533_v19, 0.0  ;;  %v4535_v62 = vld [vmem:[#allocation8_spill] sm:$0xff]  ;;  %v2230_v19 = vpop.permute.xlu0 %2229 }
 0x6f9   :  { %v2872_v3 = vpop.eup %2871  ;;  %v2178_v1 = vmul.f32 %v2870_v21, %v4108_v56  ;;  %v2192_v60 = vmul.f32 %v2176_v37, %v1503_v18  ;;  %v2198_v49 = vadd.f32 %v2190_v57, %v2182_v33  ;;  %v2187_v56 = vadd.f32 %v4537_v54, %v4535_v62 }
 0x6fa   :  { %v2179_v58 = vmul.f32 %v2872_v3, %v4112_v26  ;;  %v2193_v55 = vmul.f32 %v2177_v8, %v1505_v0  ;;  %v2199_v13 = vadd.f32 %v2191_v25, %v2183_v10  ;;  %v2186_v12 = vadd.f32 %v4534_v53, %v4532_v24 }
 0x6fb   :  { %v2194_v34 = vmul.f32 %v2178_v1, %v1580_v42  ;;  %v2200_v9 = vadd.f32 %v2192_v60, %v2184_v47  ;;  %v2204_v47 = vld [vmem:[%s4426_s17] sm:$0xff] }
 0x6fc   :  { %v2195_v52 = vmul.f32 %v2179_v58, %v1582_v44  ;;  %v2201_v59 = vadd.f32 %v2193_v55, %v2185_v16 }
 0x6fd   :  { %v2719_v61 = vpack.c.bf16 %v2200_v9, %v2196_v2  ;;  %v2202_v33 = vadd.f32 %v2194_v34, %v2186_v12  ;;  %v2225_v2 = vpop.permute.xlu1 %2224 }
 0x6fe   :  { %v2717_v4 = vpack.c.bf16 %v2201_v59, %v2197_v48  ;;  %v2203_v26 = vadd.f32 %v2195_v52, %v2187_v56 }
 0x6ff   :  { %v2727_v38 = vpack.c.bf16 %v2202_v33, %v2198_v49 }
 0x700   :  { %2718 = vmatprep.subr.bf16.mxu0 %v2717_v4  ;;  %v2725_v43 = vpack.c.bf16 %v2203_v26, %v2199_v13 }
 0x701   :  { %2720 = vmatpush1.bf16.msra.mxu0 %v2719_v61 }
 0x702   :  { %2726 = vmatprep.subr.bf16.mxu1 %v2725_v43  ;;  %2722 = vmatprep.subr.bf16.mxu0 %v2721_v63 }
 0x703   :  { %2728 = vmatpush1.bf16.msra.mxu1 %v2727_v38 }
 0x704   :  { %2730 = vmatprep.subr.bf16.mxu1 %v2729_v7 }
 0x705   :  { %2724 = vmatpush1.bf16.msra.mxu0 %v2723_v5 }
 0x707   :  { %2732 = vmatpush1.bf16.msra.mxu1 %v2731_v29 }
 0x708   :  { %2573 = vmatmul.mubr.msk.f32.vlgmr.msra.gmra.mrb[26].mxu0 %vm92_vm0, %v2204_v47 }
 0x709   :  { %2314 = vmatprep.mubr.f32.mxu0 %v4538_v27 }
 0x70a   :  { %2577 = vmatmul.mubr.msk.f32.vlgmr.msra.gmra.mrb[26].mxu1 %vm92_vm0, %v2204_v47 }
 0x70b   :  { %2403 = vmatprep.mubr.f32.mxu1 %v4538_v27 }
 0x70c   :  { %2574 = vmatmul.mubr.msk.f32.gmra.mrb[28].mxu0 %vm92_vm0, %v2205_v6 }
 0x70d   :  { %2320 = vmatprep.mubr.f32.mxu0 %v4538_v27 }
 0x70e   :  { %2578 = vmatmul.mubr.msk.f32.gmra.mrb[28].mxu1 %vm92_vm0, %v2205_v6 }
 0x70f   :  { %2409 = vmatprep.mubr.f32.mxu1 %v4538_v27 }
 0x710   :  { %2575 = vmatmul.mubr.msk.f32.gmra.mrb[30].mxu0 %vm92_vm0, %v2206_v14 }
 0x711   :  { %2326 = vmatprep.mubr.f32.mxu0 %v4538_v27 }
 0x712   :  { %2579 = vmatmul.mubr.msk.f32.gmra.mrb[30].mxu1 %vm92_vm0, %v2206_v14 }
 0x713   :  { %2415 = vmatprep.mubr.f32.mxu1 %v4538_v27 }
 0x714   :  { %2576 = vmatmul.mubr.msk.f32.gmra.mrb[32].mxu0 %vm92_vm0, %v2207_v28 }
 0x716   :  { %2580 = vmatmul.mubr.msk.f32.gmra.mrb[32].mxu1 %vm92_vm0, %v2207_v28 }
 0x7db   :  { %v2310_v11 = vpop.f32.mrb[26].mxu0 }
 0x7dc   :  { %v4296_v5 = vadd.f32 %v2310_v11, %v2215_v39  ;;  %v2312_v63 = vpop.f32.mrb[27].mxu0 }
 0x7dd   :  { %v2399_v50 = vpop.f32.mrb[26].mxu1  ;;  %v4298_v23 = vadd.f32 %v2312_v63, %v2215_v39 }
 0x7de   :  { %v2422_v29 = vsub.f32 0.0, %v4296_v5  ;;  %v4301_v7 = vadd.f32 %v2399_v50, %v2215_v39  ;;  %v2401_v20 = vpop.f32.mrb[27].mxu1 }
 0x7df   :  { %v2423_v16 = vsub.f32 0.0, %v4298_v23  ;;  %v4304_v31 = vadd.f32 %v2401_v20, %v2215_v39  ;;  %v2316_v30 = vpop.f32.mrb[28].mxu0 }
 0x7e0   :  { %v2438_v51 = vmul.f32 1.442695, %v2422_v29  ;;  %v2424_v22 = vsub.f32 0.0, %v4301_v7  ;;  %v4307_v36 = vadd.f32 %v2316_v30, %v2220_v40  ;;  %v2318_v41 = vpop.f32.mrb[29].mxu0 }
 0x7e1   :  { %v2440_v10 = vmul.f32 1.442695, %v2423_v16  ;;  %v2425_v45 = vsub.f32 0.0, %v4304_v31  ;;  %v2405_v17 = vpop.f32.mrb[28].mxu1  ;;  %v4310_v46 = vadd.f32 %v2318_v41, %v2220_v40 }
 0x7e2   :  { %2873 = vpow2.f32 %v2438_v51  ;;  %v2442_v32 = vmul.f32 1.442695, %v2424_v22  ;;  %v2426_v37 = vsub.f32 0.0, %v4307_v36  ;;  %v4313_v18 = vadd.f32 %v2405_v17, %v2220_v40  ;;  %v2407_v57 = vpop.f32.mrb[29].mxu1 }
 0x7e3   :  { %2875 = vpow2.f32 %v2440_v10  ;;  %v2444_v21 = vmul.f32 1.442695, %v2425_v45  ;;  %v2427_v8 = vsub.f32 0.0, %v4310_v46  ;;  %v4316_v0 = vadd.f32 %v2407_v57, %v2220_v40  ;;  %v2322_v25 = vpop.f32.mrb[30].mxu0 }
 0x7e4   :  { %2877 = vpow2.f32 %v2442_v32  ;;  %v2446_v48 = vmul.f32 1.442695, %v2426_v37  ;;  %v2428_v3 = vsub.f32 0.0, %v4313_v18  ;;  %v4319_v1 = vadd.f32 %v2322_v25, %v2225_v2  ;;  %v2324_v42 = vpop.f32.mrb[31].mxu0 }
 0x7e5   :  { %2879 = vpow2.f32 %v2444_v21  ;;  %v2448_v60 = vmul.f32 1.442695, %v2427_v8  ;;  %v2429_v49 = vsub.f32 0.0, %v4316_v0  ;;  %v2411_v58 = vpop.f32.mrb[30].mxu1  ;;  %v4322_v35 = vadd.f32 %v2324_v42, %v2225_v2 }
 0x7e6   :  { %2881 = vpow2.f32 %v2446_v48  ;;  %v2450_v44 = vmul.f32 1.442695, %v2428_v3  ;;  %v2430_v55 = vsub.f32 0.0, %v4319_v1  ;;  %v4325_v13 = vadd.f32 %v2411_v58, %v2225_v2  ;;  %v2413_v24 = vpop.f32.mrb[31].mxu1 }
 0x7e7   :  { %2883 = vpow2.f32 %v2448_v60  ;;  %v2452_v53 = vmul.f32 1.442695, %v2429_v49  ;;  %v2431_v12 = vsub.f32 0.0, %v4322_v35  ;;  %v4328_v34 = vadd.f32 %v2413_v24, %v2225_v2  ;;  %v2328_v9 = vpop.f32.mrb[32].mxu0 }
 0x7e8   :  { %2885 = vpow2.f32 %v2450_v44  ;;  %v2454_v62 = vmul.f32 1.442695, %v2430_v55  ;;  %v2432_v15 = vsub.f32 0.0, %v4325_v13  ;;  %v4331_v54 = vadd.f32 %v2328_v9, %v2230_v19  ;;  %v2330_v56 = vpop.f32.mrb[33].mxu0 }
 0x7e9   :  { %2887 = vpow2.f32 %v2452_v53  ;;  %v2456_v52 = vmul.f32 1.442695, %v2431_v12  ;;  %v2433_v59 = vsub.f32 0.0, %v4328_v34  ;;  %v2417_v61 = vpop.f32.mrb[32].mxu1  ;;  %v4337_v16 = vadd.f32 %v2330_v56, %v2230_v19 }
 0x7ea   :  { %2889 = vpow2.f32 %v2454_v62  ;;  %v2458_v33 = vmul.f32 1.442695, %v2432_v15  ;;  %v2434_v4 = vsub.f32 0.0, %v4331_v54  ;;  %v2419_v26 = vpop.f32.mrb[33].mxu1  ;;  %v4335_v29 = vadd.f32 %v2417_v61, %v2230_v19 }
 0x7eb   :  { %2891 = vpow2.f32 %v2456_v52  ;;  %v2460_v38 = vmul.f32 1.442695, %v2433_v59  ;;  %v4339_v22 = vadd.f32 %v2419_v26, %v2230_v19  ;;  %v2435_v2 = vsub.f32 0.0, %v4337_v16 }
 0x7ec   :  { %v2874_v43 = vpop.eup %2873  ;;  %2893 = vpow2.f32 %v2458_v33  ;;  %v2462_v47 = vmul.f32 1.442695, %v2434_v4  ;;  %v2436_v32 = vsub.f32 0.0, %v4335_v29 }
 0x7ed   :  { %v2876_v27 = vpop.eup %2875  ;;  %v2470_v6 = vadd.f32 1.0, %v2874_v43  ;;  %2895 = vpow2.f32 %v2460_v38  ;;  %v2437_v25 = vsub.f32 0.0, %v4339_v22  ;;  %v2464_v55 = vmul.f32 1.442695, %v2435_v2 }
 0x7ee   :  { %v2878_v14 = vpop.eup %2877  ;;  %v2471_v28 = vadd.f32 1.0, %v2876_v27  ;;  %2897 = vpow2.f32 %v2462_v47  ;;  %v2466_v49 = vmul.f32 1.442695, %v2436_v32 }
 0x7ef   :  { %v2880_v39 = vpop.eup %2879  ;;  %2899 = vrcp.f32 %v2470_v6  ;;  %v2472_v11 = vadd.f32 1.0, %v2878_v14  ;;  %v2468_v53 = vmul.f32 1.442695, %v2437_v25 }
 0x7f0   :  { %v2882_v63 = vpop.eup %2881  ;;  %2901 = vrcp.f32 %v2471_v28  ;;  %v2473_v50 = vadd.f32 1.0, %v2880_v39 }
 0x7f1   :  { %v2884_v20 = vpop.eup %2883  ;;  %2903 = vrcp.f32 %v2472_v11  ;;  %v2474_v40 = vadd.f32 1.0, %v2882_v63 }
 0x7f2   :  { %v2886_v30 = vpop.eup %2885  ;;  %2905 = vrcp.f32 %v2473_v50  ;;  %v2475_v51 = vadd.f32 1.0, %v2884_v20 }
 0x7f3   :  { %v2888_v41 = vpop.eup %2887  ;;  %2907 = vrcp.f32 %v2474_v40  ;;  %v2476_v10 = vadd.f32 1.0, %v2886_v30 }
 0x7f4   :  { %v2890_v45 = vpop.eup %2889  ;;  %2909 = vrcp.f32 %v2475_v51  ;;  %v2477_v17 = vadd.f32 1.0, %v2888_v41 }
 0x7f5   :  { %v2892_v37 = vpop.eup %2891  ;;  %2911 = vrcp.f32 %v2476_v10  ;;  %v2478_v57 = vadd.f32 1.0, %v2890_v45 }
 0x7f6   :  { %v2894_v21 = vpop.eup %2893  ;;  %2913 = vrcp.f32 %v2477_v17  ;;  %v2479_v8 = vadd.f32 1.0, %v2892_v37 }
 0x7f7   :  { %v2896_v48 = vpop.eup %2895  ;;  %2915 = vrcp.f32 %v2478_v57  ;;  %v2480_v3 = vadd.f32 1.0, %v2894_v21 }
 0x7f8   :  { %v2898_v42 = vpop.eup %2897  ;;  %2917 = vrcp.f32 %v2479_v8  ;;  %v2481_v60 = vadd.f32 1.0, %v2896_v48 }
 0x7f9   :  { %v2900_v58 = vpop.eup %2899  ;;  %2919 = vrcp.f32 %v2480_v3  ;;  %v2482_v44 = vadd.f32 1.0, %v2898_v42 }
 0x7fa   :  { %v2902_v24 = vpop.eup %2901  ;;  %v2502_v19 = vmul.f32 %v2900_v58, %v4296_v5  ;;  %2921 = vrcp.f32 %v2481_v60 }
 0x7fb   :  { %v2904_v12 = vpop.eup %2903  ;;  %v2503_v9 = vmul.f32 %v2902_v24, %v4298_v23  ;;  %2923 = vrcp.f32 %v2482_v44 }
 0x7fc   :  { %v2906_v62 = vpop.eup %2905  ;;  %2518 = vst [vmem:[%s4427_s19] sm:$0xff] %v2502_v19  ;;  %v2504_v15 = vmul.f32 %v2904_v12, %v4301_v7  ;;  %2925 = vpow2.f32 %v2466_v49 }
 0x7fd   :  { %v2908_v56 = vpop.eup %2907  ;;  %2519 = vst [vmem:[%s4427_s19 + $0x8] sm:$0xff] %v2503_v9  ;;  %v2505_v5 = vmul.f32 %v2906_v62, %v4304_v31  ;;  %2927 = vpow2.f32 %v2464_v55 }
 0x7fe   :  { %v2910_v52 = vpop.eup %2909  ;;  %2520 = vst [vmem:[%s4427_s19 + $0x10] sm:$0xff] %v2504_v15  ;;  %v2506_v23 = vmul.f32 %v2908_v56, %v4307_v36  ;;  %2929 = vpow2.f32 %v2468_v53 }
 0x7ff   :  { %v2912_v59 = vpop.eup %2911  ;;  %2521 = vst [vmem:[%s4427_s19 + $0x18] sm:$0xff] %v2505_v5  ;;  %v2507_v7 = vmul.f32 %v2910_v52, %v4310_v46 }
 0x800   :  { %v2914_v61 = vpop.eup %2913  ;;  %2522 = vst [vmem:[%s4427_s19 + $0x20] sm:$0xff] %v2506_v23  ;;  %v2508_v31 = vmul.f32 %v2912_v59, %v4313_v18 }
 0x801   :  { %v2916_v33 = vpop.eup %2915  ;;  %2523 = vst [vmem:[%s4427_s19 + $0x28] sm:$0xff] %v2507_v7  ;;  %v2509_v36 = vmul.f32 %v2914_v61, %v4316_v0 }
 0x802   :  { %v2918_v4 = vpop.eup %2917  ;;  %2524 = vst [vmem:[%s4427_s19 + $0x30] sm:$0xff] %v2508_v31  ;;  %v2510_v46 = vmul.f32 %v2916_v33, %v4319_v1 }
 0x803   :  { %v2920_v26 = vpop.eup %2919  ;;  %2525 = vst [vmem:[%s4427_s19 + $0x38] sm:$0xff] %v2509_v36  ;;  %v2511_v18 = vmul.f32 %v2918_v4, %v4322_v35 }
 0x804   :  { %v2922_v38 = vpop.eup %2921  ;;  %2526 = vst [vmem:[%s4427_s19 + $0x40] sm:$0xff] %v2510_v46  ;;  %v2512_v0 = vmul.f32 %v2920_v26, %v4325_v13 }
 0x805   :  { %v2924_v43 = vpop.eup %2923  ;;  %2527 = vst [vmem:[%s4427_s19 + $0x48] sm:$0xff] %v2511_v18  ;;  %v2513_v1 = vmul.f32 %v2922_v38, %v4328_v34 }
 0x806   :  { %v2926_v47 = vpop.eup %2925  ;;  %2528 = vst [vmem:[%s4427_s19 + $0x50] sm:$0xff] %v2512_v0  ;;  %v2514_v35 = vmul.f32 %v2924_v43, %v4331_v54 }
 0x807   :  { %v2928_v27 = vpop.eup %2927  ;;  %2529 = vst [vmem:[%s4427_s19 + $0x58] sm:$0xff] %v2513_v1  ;;  %v2484_v13 = vadd.f32 1.0, %v2926_v47 }
 0x808   :  { %v2930_v6 = vpop.eup %2929  ;;  %2530 = vst [vmem:[%s4427_s19 + $0x60] sm:$0xff] %v2514_v35  ;;  %v2483_v14 = vadd.f32 1.0, %v2928_v27 }
 0x809   :  { %2931 = vrcp.f32 %v2484_v13  ;;  %v2485_v34 = vadd.f32 1.0, %v2930_v6 }
 0x80a   :  { %2933 = vrcp.f32 %v2483_v14 }
 0x80b   :  { %2935 = vrcp.f32 %v2485_v34 }
 0x813   :  { %v2932_v28 = vpop.eup %2931 }
 0x814   :  { %v2934_v39 = vpop.eup %2933  ;;  %v2516_v54 = vmul.f32 %v2932_v28, %v4335_v29 }
 0x815   :  { %v2936_v11 = vpop.eup %2935  ;;  %v2515_v63 = vmul.f32 %v2934_v39, %v4337_v16 }
 0x816   :  { %2532 = vst [vmem:[%s4427_s19 + $0x70] sm:$0xff] %v2516_v54  ;;  %v2517_v50 = vmul.f32 %v2936_v11, %v4339_v22 }
 0x817   :  { %2531 = vst [vmem:[%s4427_s19 + $0x68] sm:$0xff] %v2515_v63 }
 0x818   :  { %2533 = vst [vmem:[%s4427_s19 + $0x78] sm:$0xff] %v2517_v50 }

</bundles_post_ra>
